<compile_context>
chip_gen: v7x
topology: tpu7x:2x2x1
jax: 0.10.0
libtpu: 0.0.40
codegen_flags: <defaults>
</compile_context>

<pallas_src>
import functools

import jax
import jax.numpy as jnp
from jax import lax
from jax.experimental import pallas as pl
from jax.experimental.pallas import tpu as pltpu


def _next_pow2(n: int) -> int:
    return 1 << (n - 1).bit_length()


def _deconv_core_kernel(K, Cin, WP, Q, x_ref, w_ref, b_ref, o_ref, p_ref):
    # x_ref : (Cin, FL)       zero-padded image, channel-major, row pitch WP (power of two),
    #                         prepared by the wrapper (includes one zero slack row at the end)
    # w_ref : (G, K*K*Cin)    block-diagonal flipped deconv weights
    # b_ref : (G, 1)          bias
    # o_ref : (G, Q)          hardswish'd core for the odd-odd output sites (WP-pitched rows)
    # p_ref : (K*K*Cin, Q)    im2col scratch
    #
    # 1) im2col: every one of the K*K taps is a pure LANE shift of the padded flat image
    #    (no sublane-offset slices, no reshapes).  Destination slabs are 32-row aligned.
    for kh in range(K):
        for kw in range(K):
            t = kh * K + kw
            off = kh * WP + kw
            p_ref[t * Cin:(t + 1) * Cin, :] = x_ref[:, off:off + Q]

    # 2) all K*K*CPG taps of the grouped deconv as ONE MXU matmul (weights loaded once;
    #    the (G, Q) accumulator is only a handful of vregs).
    core = jnp.dot(w_ref[...], p_ref[...],
                   preferred_element_type=jnp.float32)              # (G, Q)

    # 3) hardswish-style gate on the core sites only: v1 * clamp(v1 + 3, 0, 6) / 6
    v1 = core + b_ref[...]
    v4 = jnp.clip(v1 + 3.0, 0.0, 6.0)
    o_ref[...] = v1 * v4 * (1.0 / 6.0)


def deconv_hardswish(x, w_t, bias, *, stride=2, padding=1, dilation=2, groups=16):
    """x: (1, Cin, H, W) NCHW.  w_t: (Cin, Cout//groups=1, K, K) (PyTorch ConvTranspose2d
    weight layout).  Returns (1, Cout, Hout, Wout) NCHW float32."""
    N, Cin, H, W = x.shape
    assert N == 1, "kernel assumes batch 1 (module input is (1, 32, H, W))"
    K = w_t.shape[2]
    G = groups
    CPG = Cin // G
    assert w_t.shape == (Cin, 1, K, K), "one output channel per group"
    assert (stride, padding, dilation, K) == (2, 1, 2, 5), \
        "checkerboard decomposition is specialised to the module's hyper-parameters"

    Hout = (H - 1) * stride - 2 * padding + dilation * (K - 1) + 1   # = 2H + 5
    Wout = (W - 1) * stride - 2 * padding + dilation * (K - 1) + 1   # = 2W + 5
    A, B = Hout // 2, Wout // 2            # only odd (ho, wo) sites receive conv taps
    PAD = (dilation * (K - 1) - padding - 1) // 2                    # = 3 (core-conv halo)
    WP = _next_pow2(W + 2 * PAD)           # power-of-two row pitch of the padded image
    assert WP >= W + 2 * PAD and WP >= 4
    HP = H + 2 * PAD + 1                   # +1 slack row: deepest im2col read (tap (4,4) on
    #                                        the padded columns b >= B) overruns by < 1 row
    FL = HP * WP                           # flat padded image length
    Q = A * WP                             # lane width of the im2col / core matrices

    # --- wrapper-side layout glue (all tiny, fused XLA ops) ---
    # zero-pad the image to the power-of-two row pitch and flatten (replaces kernel step 1)
    xf = x.astype(jnp.float32).reshape(Cin, H, W)
    x_pad = jnp.pad(xf, ((0, 0), (PAD, HP - H - PAD), (PAD, WP - W - PAD)))
    x_flat = x_pad.reshape(Cin, FL)

    # flipped weights folded into a block-diagonal tap matrix:
    # wm[g, (kh*K+kw)*Cin + g*CPG + c] = w_t[g*CPG + c, 0, K-1-kh, K-1-kw]
    wf = jnp.flip(w_t[:, 0].astype(jnp.float32), axis=(-2, -1))      # (Cin, K, K)
    wg = wf.reshape(G, CPG, K, K)
    eye = jnp.eye(G, dtype=jnp.float32)
    wm = jnp.einsum('gckl,gh->gklhc', wg, eye).reshape(G, K * K * Cin)   # (16, 800)
    b2 = bias.astype(jnp.float32).reshape(G, 1)

    kernel = functools.partial(_deconv_core_kernel, K, Cin, WP, Q)

    cost = pl.CostEstimate(
        flops=2 * G * (K * K * Cin) * Q + 5 * G * Q,
        transcendentals=0,
        bytes_accessed=4 * (Cin * FL + G * K * K * Cin + G + G * Q))

    core = pl.pallas_call(
        kernel,
        out_shape=jax.ShapeDtypeStruct((G, Q), jnp.float32),
        in_specs=[pl.BlockSpec(memory_space=pltpu.MemorySpace.VMEM)] * 3,
        out_specs=pl.BlockSpec(memory_space=pltpu.MemorySpace.VMEM),
        scratch_shapes=[pltpu.VMEM((K * K * Cin, Q), jnp.float32)],   # im2col (~0.7 MB)
        cost_estimate=cost,
    )(x_flat, wm, b2)

    # --- wrapper-side interleave (replaces the old 0/1 scatter matmul) ---
    # Columns b >= B of each WP-pitched core row are cross-row garbage (they only exist
    # because of the power-of-two pitch); they are discarded by the [:, :, :B] slice below.
    core_v = core.reshape(G, A, WP)[:, :, :B]                         # (G, A, B) valid sites

    # Even output sites (any coordinate even) receive only the hardswish'd bias.
    hb = bias.astype(jnp.float32)
    hb = hb * jnp.clip(hb + 3.0, 0.0, 6.0) * (1.0 / 6.0)              # (G,)
    hb_b = jnp.broadcast_to(hb.reshape(G, 1, 1), (G, A, B))
    # interleave columns: [hb, core0, hb, core1, ..., hb, core_{B-1}] + trailing hb column
    row_odd = jnp.stack([hb_b, core_v], axis=-1).reshape(G, A, 2 * B)
    row_odd = jnp.concatenate(
        [row_odd, jnp.broadcast_to(hb.reshape(G, 1, 1), (G, A, 1))], axis=-1)   # (G, A, Wout)
    row_even = jnp.broadcast_to(hb.reshape(G, 1, 1), (G, A, Wout))
    # interleave rows: even rows all-hb, odd rows from row_odd, + trailing hb row
    rows = jnp.stack([row_even, row_odd], axis=2).reshape(G, 2 * A, Wout)
    out = jnp.concatenate(
        [rows, jnp.broadcast_to(hb.reshape(G, 1, 1), (G, 1, Wout))], axis=1)    # (G, Hout, Wout)

    return out.reshape(1, G, Hout, Wout)


def _reference(x, w_t, bias, *, stride=2, padding=1, dilation=2, groups=16):
    """Pure-JAX reference: transposed conv as lhs-dilated conv with flipped kernel,
    then the hardswish-style epilogue."""
    Cin = x.shape[1]
    K = w_t.shape[2]
    G = groups
    CPG = Cin // G
    pp = dilation * (K - 1) - padding
    w_conv = jnp.flip(w_t[:, 0], axis=(-2, -1)).reshape(G, CPG, K, K)   # OIHW (16,2,5,5)
    v1 = lax.conv_general_dilated(
        x.astype(jnp.float32), w_conv.astype(jnp.float32),
        window_strides=(1, 1), padding=[(pp, pp), (pp, pp)],
        lhs_dilation=(stride, stride), rhs_dilation=(dilation, dilation),
        dimension_numbers=("NCHW", "OIHW", "NCHW"), feature_group_count=G)
    v1 = v1 + bias.reshape(1, G, 1, 1)
    v4 = jnp.clip(v1 + 3.0, 0.0, 6.0)
    return v1 * v4 / 6.0


if __name__ == "__main__":
    key = jax.random.PRNGKey(0)
    kw_, kb_, kx_ = jax.random.split(key, 3)

    Cin, G, K = 32, 16, 5
    # deterministic synthetic parameters (ConvTranspose2d weight layout: (Cin, Cout//G, K, K))
    w_t = jax.random.normal(kw_, (Cin, 1, K, K), jnp.float32) * 0.1
    bias = jax.random.normal(kb_, (G,), jnp.float32) * 0.1
    # small input consistent with the module's 32 input channels
    x = jax.random.normal(kx_, (1, Cin, 12, 10), jnp.float32)

    fwd = jax.jit(deconv_hardswish)
    out = jax.block_until_ready(fwd(x, w_t, bias))
    ref = jax.block_until_ready(_reference(x, w_t, bias))

    assert out.shape == ref.shape == (1, 16, 29, 25), (out.shape, ref.shape)
    assert jnp.allclose(out, ref, atol=1e-3, rtol=1e-3), float(jnp.max(jnp.abs(out - ref)))
    print("KERNEL_OK")
</pallas_src>

<mosaic_0001>
module attributes {stable_mosaic.version = 11 : i64} {
  func.func @_deconv_core_kernel(%arg0: memref<32x304xf32, #tpu.memory_space<vmem>>, %arg1: memref<16x800xf32, #tpu.memory_space<vmem>>, %arg2: memref<16x1xf32, #tpu.memory_space<vmem>>, %arg3: memref<16x224xf32, #tpu.memory_space<vmem>>, %arg4: memref<800x224xf32, #tpu.memory_space<vmem>>) attributes {dimension_semantics = [], scalar_prefetch = 0 : i64, scratch_operands = 1 : i64, tpu.core_type = #tpu.core_type<tc>} {
    %c0 = arith.constant 0 : index
    %c0_0 = arith.constant 0 : index
    %0 = vector.load %arg0[%c0, %c0_0] : memref<32x304xf32, #tpu.memory_space<vmem>>, vector<32x224xf32>
    %c0_1 = arith.constant 0 : index
    %c0_2 = arith.constant 0 : index
    %1 = vector.load %arg4[%c0_1, %c0_2] : memref<800x224xf32, #tpu.memory_space<vmem>>, vector<32x224xf32>
    tpu.vector_store %arg4[%c0_1, %c0_2], %0 {strides = array<i32>} : memref<800x224xf32, #tpu.memory_space<vmem>>, vector<32x224xf32>,
    %c0_3 = arith.constant 0 : index
    %c1 = arith.constant 1 : index
    %2 = vector.load %arg0[%c0_3, %c1] : memref<32x304xf32, #tpu.memory_space<vmem>>, vector<32x224xf32>
    %c32 = arith.constant 32 : index
    %c0_4 = arith.constant 0 : index
    %3 = vector.load %arg4[%c32, %c0_4] : memref<800x224xf32, #tpu.memory_space<vmem>>, vector<32x224xf32>
    tpu.vector_store %arg4[%c32, %c0_4], %2 {strides = array<i32>} : memref<800x224xf32, #tpu.memory_space<vmem>>, vector<32x224xf32>,
    %c0_5 = arith.constant 0 : index
    %c2 = arith.constant 2 : index
    %4 = vector.load %arg0[%c0_5, %c2] : memref<32x304xf32, #tpu.memory_space<vmem>>, vector<32x224xf32>
    %c64 = arith.constant 64 : index
    %c0_6 = arith.constant 0 : index
    %5 = vector.load %arg4[%c64, %c0_6] : memref<800x224xf32, #tpu.memory_space<vmem>>, vector<32x224xf32>
    tpu.vector_store %arg4[%c64, %c0_6], %4 {strides = array<i32>} : memref<800x224xf32, #tpu.memory_space<vmem>>, vector<32x224xf32>,
    %c0_7 = arith.constant 0 : index
    %c3 = arith.constant 3 : index
    %6 = vector.load %arg0[%c0_7, %c3] : memref<32x304xf32, #tpu.memory_space<vmem>>, vector<32x224xf32>
    %c96 = arith.constant 96 : index
    %c0_8 = arith.constant 0 : index
    %7 = vector.load %arg4[%c96, %c0_8] : memref<800x224xf32, #tpu.memory_space<vmem>>, vector<32x224xf32>
    tpu.vector_store %arg4[%c96, %c0_8], %6 {strides = array<i32>} : memref<800x224xf32, #tpu.memory_space<vmem>>, vector<32x224xf32>,
    %c0_9 = arith.constant 0 : index
    %c4 = arith.constant 4 : index
    %8 = vector.load %arg0[%c0_9, %c4] : memref<32x304xf32, #tpu.memory_space<vmem>>, vector<32x224xf32>
    %c128 = arith.constant 128 : index
    %c0_10 = arith.constant 0 : index
    %9 = vector.load %arg4[%c128, %c0_10] : memref<800x224xf32, #tpu.memory_space<vmem>>, vector<32x224xf32>
    tpu.vector_store %arg4[%c128, %c0_10], %8 {strides = array<i32>} : memref<800x224xf32, #tpu.memory_space<vmem>>, vector<32x224xf32>,
    %c0_11 = arith.constant 0 : index
    %c16 = arith.constant 16 : index
    %10 = vector.load %arg0[%c0_11, %c16] : memref<32x304xf32, #tpu.memory_space<vmem>>, vector<32x224xf32>
    %c160 = arith.constant 160 : index
    %c0_12 = arith.constant 0 : index
    %11 = vector.load %arg4[%c160, %c0_12] : memref<800x224xf32, #tpu.memory_space<vmem>>, vector<32x224xf32>
    tpu.vector_store %arg4[%c160, %c0_12], %10 {strides = array<i32>} : memref<800x224xf32, #tpu.memory_space<vmem>>, vector<32x224xf32>,
    %c0_13 = arith.constant 0 : index
    %c17 = arith.constant 17 : index
    %12 = vector.load %arg0[%c0_13, %c17] : memref<32x304xf32, #tpu.memory_space<vmem>>, vector<32x224xf32>
    %c192 = arith.constant 192 : index
    %c0_14 = arith.constant 0 : index
    %13 = vector.load %arg4[%c192, %c0_14] : memref<800x224xf32, #tpu.memory_space<vmem>>, vector<32x224xf32>
    tpu.vector_store %arg4[%c192, %c0_14], %12 {strides = array<i32>} : memref<800x224xf32, #tpu.memory_space<vmem>>, vector<32x224xf32>,
    %c0_15 = arith.constant 0 : index
    %c18 = arith.constant 18 : index
    %14 = vector.load %arg0[%c0_15, %c18] : memref<32x304xf32, #tpu.memory_space<vmem>>, vector<32x224xf32>
    %c224 = arith.constant 224 : index
    %c0_16 = arith.constant 0 : index
    %15 = vector.load %arg4[%c224, %c0_16] : memref<800x224xf32, #tpu.memory_space<vmem>>, vector<32x224xf32>
    tpu.vector_store %arg4[%c224, %c0_16], %14 {strides = array<i32>} : memref<800x224xf32, #tpu.memory_space<vmem>>, vector<32x224xf32>,
    %c0_17 = arith.constant 0 : index
    %c19 = arith.constant 19 : index
    %16 = vector.load %arg0[%c0_17, %c19] : memref<32x304xf32, #tpu.memory_space<vmem>>, vector<32x224xf32>
    %c256 = arith.constant 256 : index
    %c0_18 = arith.constant 0 : index
    %17 = vector.load %arg4[%c256, %c0_18] : memref<800x224xf32, #tpu.memory_space<vmem>>, vector<32x224xf32>
    tpu.vector_store %arg4[%c256, %c0_18], %16 {strides = array<i32>} : memref<800x224xf32, #tpu.memory_space<vmem>>, vector<32x224xf32>,
    %c0_19 = arith.constant 0 : index
    %c20 = arith.constant 20 : index
    %18 = vector.load %arg0[%c0_19, %c20] : memref<32x304xf32, #tpu.memory_space<vmem>>, vector<32x224xf32>
    %c288 = arith.constant 288 : index
    %c0_20 = arith.constant 0 : index
    %19 = vector.load %arg4[%c288, %c0_20] : memref<800x224xf32, #tpu.memory_space<vmem>>, vector<32x224xf32>
    tpu.vector_store %arg4[%c288, %c0_20], %18 {strides = array<i32>} : memref<800x224xf32, #tpu.memory_space<vmem>>, vector<32x224xf32>,
    %c0_21 = arith.constant 0 : index
    %c32_22 = arith.constant 32 : index
    %20 = vector.load %arg0[%c0_21, %c32_22] : memref<32x304xf32, #tpu.memory_space<vmem>>, vector<32x224xf32>
    %c320 = arith.constant 320 : index
    %c0_23 = arith.constant 0 : index
    %21 = vector.load %arg4[%c320, %c0_23] : memref<800x224xf32, #tpu.memory_space<vmem>>, vector<32x224xf32>
    tpu.vector_store %arg4[%c320, %c0_23], %20 {strides = array<i32>} : memref<800x224xf32, #tpu.memory_space<vmem>>, vector<32x224xf32>,
    %c0_24 = arith.constant 0 : index
    %c33 = arith.constant 33 : index
    %22 = vector.load %arg0[%c0_24, %c33] : memref<32x304xf32, #tpu.memory_space<vmem>>, vector<32x224xf32>
    %c352 = arith.constant 352 : index
    %c0_25 = arith.constant 0 : index
    %23 = vector.load %arg4[%c352, %c0_25] : memref<800x224xf32, #tpu.memory_space<vmem>>, vector<32x224xf32>
    tpu.vector_store %arg4[%c352, %c0_25], %22 {strides = array<i32>} : memref<800x224xf32, #tpu.memory_space<vmem>>, vector<32x224xf32>,
    %c0_26 = arith.constant 0 : index
    %c34 = arith.constant 34 : index
    %24 = vector.load %arg0[%c0_26, %c34] : memref<32x304xf32, #tpu.memory_space<vmem>>, vector<32x224xf32>
    %c384 = arith.constant 384 : index
    %c0_27 = arith.constant 0 : index
    %25 = vector.load %arg4[%c384, %c0_27] : memref<800x224xf32, #tpu.memory_space<vmem>>, vector<32x224xf32>
    tpu.vector_store %arg4[%c384, %c0_27], %24 {strides = array<i32>} : memref<800x224xf32, #tpu.memory_space<vmem>>, vector<32x224xf32>,
    %c0_28 = arith.constant 0 : index
    %c35 = arith.constant 35 : index
    %26 = vector.load %arg0[%c0_28, %c35] : memref<32x304xf32, #tpu.memory_space<vmem>>, vector<32x224xf32>
    %c416 = arith.constant 416 : index
    %c0_29 = arith.constant 0 : index
    %27 = vector.load %arg4[%c416, %c0_29] : memref<800x224xf32, #tpu.memory_space<vmem>>, vector<32x224xf32>
    tpu.vector_store %arg4[%c416, %c0_29], %26 {strides = array<i32>} : memref<800x224xf32, #tpu.memory_space<vmem>>, vector<32x224xf32>,
    %c0_30 = arith.constant 0 : index
    %c36 = arith.constant 36 : index
    %28 = vector.load %arg0[%c0_30, %c36] : memref<32x304xf32, #tpu.memory_space<vmem>>, vector<32x224xf32>
    %c448 = arith.constant 448 : index
    %c0_31 = arith.constant 0 : index
    %29 = vector.load %arg4[%c448, %c0_31] : memref<800x224xf32, #tpu.memory_space<vmem>>, vector<32x224xf32>
    tpu.vector_store %arg4[%c448, %c0_31], %28 {strides = array<i32>} : memref<800x224xf32, #tpu.memory_space<vmem>>, vector<32x224xf32>,
    %c0_32 = arith.constant 0 : index
    %c48 = arith.constant 48 : index
    %30 = vector.load %arg0[%c0_32, %c48] : memref<32x304xf32, #tpu.memory_space<vmem>>, vector<32x224xf32>
    %c480 = arith.constant 480 : index
    %c0_33 = arith.constant 0 : index
    %31 = vector.load %arg4[%c480, %c0_33] : memref<800x224xf32, #tpu.memory_space<vmem>>, vector<32x224xf32>
    tpu.vector_store %arg4[%c480, %c0_33], %30 {strides = array<i32>} : memref<800x224xf32, #tpu.memory_space<vmem>>, vector<32x224xf32>,
    %c0_34 = arith.constant 0 : index
    %c49 = arith.constant 49 : index
    %32 = vector.load %arg0[%c0_34, %c49] : memref<32x304xf32, #tpu.memory_space<vmem>>, vector<32x224xf32>
    %c512 = arith.constant 512 : index
    %c0_35 = arith.constant 0 : index
    %33 = vector.load %arg4[%c512, %c0_35] : memref<800x224xf32, #tpu.memory_space<vmem>>, vector<32x224xf32>
    tpu.vector_store %arg4[%c512, %c0_35], %32 {strides = array<i32>} : memref<800x224xf32, #tpu.memory_space<vmem>>, vector<32x224xf32>,
    %c0_36 = arith.constant 0 : index
    %c50 = arith.constant 50 : index
    %34 = vector.load %arg0[%c0_36, %c50] : memref<32x304xf32, #tpu.memory_space<vmem>>, vector<32x224xf32>
    %c544 = arith.constant 544 : index
    %c0_37 = arith.constant 0 : index
    %35 = vector.load %arg4[%c544, %c0_37] : memref<800x224xf32, #tpu.memory_space<vmem>>, vector<32x224xf32>
    tpu.vector_store %arg4[%c544, %c0_37], %34 {strides = array<i32>} : memref<800x224xf32, #tpu.memory_space<vmem>>, vector<32x224xf32>,
    %c0_38 = arith.constant 0 : index
    %c51 = arith.constant 51 : index
    %36 = vector.load %arg0[%c0_38, %c51] : memref<32x304xf32, #tpu.memory_space<vmem>>, vector<32x224xf32>
    %c576 = arith.constant 576 : index
    %c0_39 = arith.constant 0 : index
    %37 = vector.load %arg4[%c576, %c0_39] : memref<800x224xf32, #tpu.memory_space<vmem>>, vector<32x224xf32>
    tpu.vector_store %arg4[%c576, %c0_39], %36 {strides = array<i32>} : memref<800x224xf32, #tpu.memory_space<vmem>>, vector<32x224xf32>,
    %c0_40 = arith.constant 0 : index
    %c52 = arith.constant 52 : index
    %38 = vector.load %arg0[%c0_40, %c52] : memref<32x304xf32, #tpu.memory_space<vmem>>, vector<32x224xf32>
    %c608 = arith.constant 608 : index
    %c0_41 = arith.constant 0 : index
    %39 = vector.load %arg4[%c608, %c0_41] : memref<800x224xf32, #tpu.memory_space<vmem>>, vector<32x224xf32>
    tpu.vector_store %arg4[%c608, %c0_41], %38 {strides = array<i32>} : memref<800x224xf32, #tpu.memory_space<vmem>>, vector<32x224xf32>,
    %c0_42 = arith.constant 0 : index
    %c64_43 = arith.constant 64 : index
    %40 = vector.load %arg0[%c0_42, %c64_43] : memref<32x304xf32, #tpu.memory_space<vmem>>, vector<32x224xf32>
    %c640 = arith.constant 640 : index
    %c0_44 = arith.constant 0 : index
    %41 = vector.load %arg4[%c640, %c0_44] : memref<800x224xf32, #tpu.memory_space<vmem>>, vector<32x224xf32>
    tpu.vector_store %arg4[%c640, %c0_44], %40 {strides = array<i32>} : memref<800x224xf32, #tpu.memory_space<vmem>>, vector<32x224xf32>,
    %c0_45 = arith.constant 0 : index
    %c65 = arith.constant 65 : index
    %42 = vector.load %arg0[%c0_45, %c65] : memref<32x304xf32, #tpu.memory_space<vmem>>, vector<32x224xf32>
    %c672 = arith.constant 672 : index
    %c0_46 = arith.constant 0 : index
    %43 = vector.load %arg4[%c672, %c0_46] : memref<800x224xf32, #tpu.memory_space<vmem>>, vector<32x224xf32>
    tpu.vector_store %arg4[%c672, %c0_46], %42 {strides = array<i32>} : memref<800x224xf32, #tpu.memory_space<vmem>>, vector<32x224xf32>,
    %c0_47 = arith.constant 0 : index
    %c66 = arith.constant 66 : index
    %44 = vector.load %arg0[%c0_47, %c66] : memref<32x304xf32, #tpu.memory_space<vmem>>, vector<32x224xf32>
    %c704 = arith.constant 704 : index
    %c0_48 = arith.constant 0 : index
    %45 = vector.load %arg4[%c704, %c0_48] : memref<800x224xf32, #tpu.memory_space<vmem>>, vector<32x224xf32>
    tpu.vector_store %arg4[%c704, %c0_48], %44 {strides = array<i32>} : memref<800x224xf32, #tpu.memory_space<vmem>>, vector<32x224xf32>,
    %c0_49 = arith.constant 0 : index
    %c67 = arith.constant 67 : index
    %46 = vector.load %arg0[%c0_49, %c67] : memref<32x304xf32, #tpu.memory_space<vmem>>, vector<32x224xf32>
    %c736 = arith.constant 736 : index
    %c0_50 = arith.constant 0 : index
    %47 = vector.load %arg4[%c736, %c0_50] : memref<800x224xf32, #tpu.memory_space<vmem>>, vector<32x224xf32>
    tpu.vector_store %arg4[%c736, %c0_50], %46 {strides = array<i32>} : memref<800x224xf32, #tpu.memory_space<vmem>>, vector<32x224xf32>,
    %c0_51 = arith.constant 0 : index
    %c68 = arith.constant 68 : index
    %48 = vector.load %arg0[%c0_51, %c68] : memref<32x304xf32, #tpu.memory_space<vmem>>, vector<32x224xf32>
    %c768 = arith.constant 768 : index
    %c0_52 = arith.constant 0 : index
    %49 = vector.load %arg4[%c768, %c0_52] : memref<800x224xf32, #tpu.memory_space<vmem>>, vector<32x224xf32>
    tpu.vector_store %arg4[%c768, %c0_52], %48 {strides = array<i32>} : memref<800x224xf32, #tpu.memory_space<vmem>>, vector<32x224xf32>,
    %c0_53 = arith.constant 0 : index
    %c0_54 = arith.constant 0 : index
    %50 = vector.load %arg1[%c0_53, %c0_54] : memref<16x800xf32, #tpu.memory_space<vmem>>, vector<16x800xf32>
    %c0_55 = arith.constant 0 : index
    %c0_56 = arith.constant 0 : index
    %51 = vector.load %arg4[%c0_55, %c0_56] : memref<800x224xf32, #tpu.memory_space<vmem>>, vector<800x224xf32>
    %cst = arith.constant dense<0.000000e+00> : vector<16x224xf32>
    %52 = tpu.matmul %50, %51, %cst {dimension_numbers = #tpu.dot_dimension_numbers<[1], [0], [0], [1], [0, 0, 1, 1], [], []>} : vector<16x800xf32>, vector<800x224xf32>, vector<16x224xf32> -> vector<16x224xf32>
    %c0_57 = arith.constant 0 : index
    %c0_58 = arith.constant 0 : index
    %53 = vector.load %arg2[%c0_57, %c0_58] : memref<16x1xf32, #tpu.memory_space<vmem>>, vector<16x1xf32>
    %54 = vector.broadcast %53 : vector<16x1xf32> to vector<16x224xf32>
    %55 = arith.addf %52, %54 : vector<16x224xf32>
    %cst_59 = arith.constant 3.000000e+00 : f32
    %56 = vector.broadcast %cst_59 : f32 to vector<16x224xf32>
    %57 = arith.addf %55, %56 : vector<16x224xf32>
    %cst_60 = arith.constant 0.000000e+00 : f32
    %cst_61 = arith.constant 6.000000e+00 : f32
    %58 = vector.broadcast %cst_60 : f32 to vector<16x224xf32>
    %59 = arith.maximumf %58, %57 : vector<16x224xf32>
    %60 = vector.broadcast %cst_61 : f32 to vector<16x224xf32>
    %61 = arith.minimumf %60, %59 : vector<16x224xf32>
    %62 = arith.mulf %55, %61 : vector<16x224xf32>
    %cst_62 = arith.constant 0.166666672 : f32
    %63 = vector.broadcast %cst_62 : f32 to vector<16x224xf32>
    %64 = arith.mulf %62, %63 : vector<16x224xf32>
    %c0_63 = arith.constant 0 : index
    %c0_64 = arith.constant 0 : index
    %65 = vector.load %arg3[%c0_63, %c0_64] : memref<16x224xf32, #tpu.memory_space<vmem>>, vector<16x224xf32>
    tpu.vector_store %arg3[%c0_63, %c0_64], %64 {strides = array<i32>} : memref<16x224xf32, #tpu.memory_space<vmem>>, vector<16x224xf32>,
    return
  }
}

</mosaic_0001>

<bundles_post_ra>
// kernel: deconv_hardswish.1
= control target key start
LH: loop header
LB: loop body
LE: loop exit
PB: predicated region body
PF: predicated region fallthrough
CT: control target
= control target key end

     0   :  { %vm23_vm0 = vcmask 785408   ;;  %s2397_s18 = smov 127   ;;  %s2398_s29 = smov 126   ;;  %vm63_vm1 = vcmask 1039360   ;;  %vm116_vm2 = vcmask 1031168   ;;  %vm169_vm3 = vcmask 1022976   ;;  %s3361_s0 = inlined_call_operand.vmem [shape: f32[32,304], index: 0, kind: input, shape index: {}]   ;;  %s3362_s1 = inlined_call_operand.vmem [shape: f32[16,800], index: 1, kind: input, shape index: {}]   ;;  %s3363_s2 = inlined_call_operand.vmem [shape: f32[16,1], index: 2, kind: input, shape index: {}]   ;;  %s3364_s3 = inlined_call_operand.vmem [shape: f32[16,224], index: 3, kind: output, shape index: {}]  }
   0x1   :  { %v2446_v0 = vld [vmem:[%s3361_s0 + $0x18] sm:$0xff]  ;;  %v2451_v1 = vld [vmem:[%s3361_s0] sm:$0xff]  ;;  %v2463_v3 = vld [vmem:[%s3361_s0 + $0x8] sm:$0xff]  ;;  %s2399_s30 = smov 125   ;;  %s2400_s4 = smov 124   ;;  %vm222_vm4 = vcmask 1014784  }
   0x2   :  { %v2456_v2 = vld [vmem:[%s3361_s0 + $0x20] sm:$0xff]  ;;  %51 = vrot.lane.b32.xlu1 %v2446_v0, %s2397_s18  ;;  %47 = vrot.lane.b32.xlu0 %v2451_v1, %s2397_s18  ;;  %v2468_v4 = vld [vmem:[%s3361_s0 + $0x38] sm:$0xff]  ;;  %24 = vst.msk [vmem:[#allocation2 + $0x8] sm:$0xff] %vm23_vm0, %v2463_v3  ;;  %v2155_v12 = vpack.c.bf16 %v2446_v0, %v2451_v1  ;;  %s2401_s5 = smov 112   ;;  %s2402_s6 = smov 111   ;;  %vm275_vm5 = vcmask 916480  }
   0x3   :  { %26 = vst.msk [vmem:[#allocation2 + $0x18] sm:$0xff] %vm23_vm0, %v2456_v2  ;;  %v2475_v5 = vld [vmem:[%s3361_s0 + $0x30] sm:$0xff]  ;;  %v2485_v7 = vld [vmem:[%s3361_s0 + $0x48] sm:$0xff]  ;;  %28 = vst.msk [vmem:[#allocation2 + $0x28] sm:$0xff] %vm23_vm0, %v2468_v4  ;;  %s2403_s7 = smov 110   ;;  %s2404_s8 = smov 109  }
   0x4   :  { %v2480_v6 = vld [vmem:[%s3361_s0 + $0x50] sm:$0xff]  ;;  %v2159_v15 = vpack.c.bf16 %v2485_v7, %v2475_v5  ;;  %v1583_v16 = vld [vmem:[%s3362_s1 + $0x8] sm:$0xff]  ;;  %s2405_s11 = smov 108   ;;  %s2406_s12 = smov 79   ;;  %v2611_v55 = vld [vmem:[%s3361_s0 + $0x40] sm:$0xff]  ;;  %vm328_vm6 = vcmask 908288  }
   0x5   :  { %30 = vst.msk [vmem:[#allocation2 + $0x38] sm:$0xff] %vm23_vm0, %v2480_v6  ;;  %1879 = vmatprep.mubr.f32.mxu1 %v1583_v16  ;;  %v2583_v36 = vld [vmem:[%s3361_s0 + $0x10] sm:$0xff]  ;;  %v2594_v44 = vld [vmem:[%s3361_s0 + $0x28] sm:$0xff]  ;;  %v2622_v59 = vld [vmem:[%s3361_s0 + $0x58] sm:$0xff]  ;;  %s2407_s21 = smov 78   ;;  %s2408_s22 = smov 77  }
   0x6   :  { %53 = vrot.lane.b32.xlu1 %v2456_v2, %s2397_s18  ;;  %49 = vrot.lane.b32.xlu0 %v2463_v3, %s2397_s18  ;;  %vm381_vm7 = vcmask 900096   ;;  %s2409_s23 = smov 96   ;;  %s2410_s24 = smov 76   ;;  %vm434_vm8 = vcmask 891904   ;;  %vm487_vm9 = vcmask 883712   ;;  %vm973_vm10 = vcmask 646144  }
   0x7   :  { %s2411_s16 = smov 95   ;;  %s2412_s17 = smov 64   ;;  %vm1046_vm11 = vcmask 637952   ;;  %vm1119_vm12 = vcmask 629760   ;;  %vm1192_vm13 = vcmask 621568   ;;  %vm608_vm14 = vcmask 777216  }
   0x8   :  { %s2413_s20 = smov 94   ;;  %s2415_s28 = smov 93   ;;  %vm1265_vm15 = vcmask 523264  }
   0x9   :  { %v1597_v9 = vld [vmem:[#allocation2 + $0x8] sm:$0xff]  ;;  %s2418_s10 = smov 61  }
   0xa   :  { %v1599_v8 = vld [vmem:[#allocation2 + $0x18] sm:$0xff]  ;;  %57 = vrot.lane.b32.xlu1 %v2468_v4, %s2397_s18  ;;  %55 = vrot.lane.b32.xlu0 %v2475_v5, %s2397_s18  ;;  %v1601_v10 = vld [vmem:[#allocation2 + $0x28] sm:$0xff] }
   0xb   :  { %v2153_v11 = vpack.c.bf16 %v1599_v8, %v1597_v9 }
   0xc   :  { %v1603_v13 = vld [vmem:[#allocation2 + $0x38] sm:$0xff] }
   0xd   :  { %v2157_v14 = vpack.c.bf16 %v1603_v13, %v1601_v10  ;;  %2154 = vmatprep.subr.bf16.mxu1 %v2153_v11 }
   0xe   :  { %61 = vrot.lane.b32.xlu1 %v2480_v6, %s2397_s18  ;;  %59 = vrot.lane.b32.xlu0 %v2485_v7, %s2397_s18 }
   0xf   :  { %2156 = vmatpush1.bf16.msra.mxu1 %v2155_v12 }
  0x10   :  { %2158 = vmatprep.subr.bf16.mxu1 %v2157_v14 }
  0x12   :  { %102 = vrot.lane.b32.xlu1 %v2463_v3, %s2398_s29  ;;  %100 = vrot.lane.b32.xlu0 %v2451_v1, %s2398_s29 }
  0x13   :  { %2160 = vmatpush1.bf16.msra.mxu1 %v2159_v15 }
  0x16   :  { %106 = vrot.lane.b32.xlu1 %v2456_v2, %s2398_s29  ;;  %104 = vrot.lane.b32.xlu0 %v2446_v0, %s2398_s29 }
  0x1a   :  { %110 = vrot.lane.b32.xlu1 %v2468_v4, %s2398_s29  ;;  %108 = vrot.lane.b32.xlu0 %v2475_v5, %s2398_s29 }
  0x1e   :  { %114 = vrot.lane.b32.xlu1 %v2480_v6, %s2398_s29  ;;  %112 = vrot.lane.b32.xlu0 %v2485_v7, %s2398_s29  ;;  %s2416_s29 = smov 62  }
  0x22   :  { %155 = vrot.lane.b32.xlu1 %v2463_v3, %s2399_s30  ;;  %153 = vrot.lane.b32.xlu0 %v2451_v1, %s2399_s30 }
  0x26   :  { %159 = vrot.lane.b32.xlu1 %v2456_v2, %s2399_s30  ;;  %157 = vrot.lane.b32.xlu0 %v2446_v0, %s2399_s30 }
  0x2a   :  { %163 = vrot.lane.b32.xlu1 %v2468_v4, %s2399_s30  ;;  %161 = vrot.lane.b32.xlu0 %v2475_v5, %s2399_s30 }
  0x2e   :  { %167 = vrot.lane.b32.xlu1 %v2480_v6, %s2399_s30  ;;  %165 = vrot.lane.b32.xlu0 %v2485_v7, %s2399_s30  ;;  %s2417_s30 = smov 92  }
  0x32   :  { %208 = vrot.lane.b32.xlu1 %v2463_v3, %s2400_s4  ;;  %206 = vrot.lane.b32.xlu0 %v2451_v1, %s2400_s4 }
  0x36   :  { %212 = vrot.lane.b32.xlu1 %v2456_v2, %s2400_s4  ;;  %210 = vrot.lane.b32.xlu0 %v2446_v0, %s2400_s4 }
  0x3a   :  { %216 = vrot.lane.b32.xlu1 %v2468_v4, %s2400_s4  ;;  %214 = vrot.lane.b32.xlu0 %v2475_v5, %s2400_s4 }
  0x3e   :  { %220 = vrot.lane.b32.xlu1 %v2480_v6, %s2400_s4  ;;  %218 = vrot.lane.b32.xlu0 %v2485_v7, %s2400_s4 }
  0x42   :  { %261 = vrot.lane.b32.xlu1 %v2463_v3, %s2401_s5  ;;  %259 = vrot.lane.b32.xlu0 %v2451_v1, %s2401_s5 }
  0x46   :  { %265 = vrot.lane.b32.xlu1 %v2456_v2, %s2401_s5  ;;  %263 = vrot.lane.b32.xlu0 %v2446_v0, %s2401_s5 }
  0x4a   :  { %269 = vrot.lane.b32.xlu1 %v2468_v4, %s2401_s5  ;;  %267 = vrot.lane.b32.xlu0 %v2475_v5, %s2401_s5 }
  0x4e   :  { %273 = vrot.lane.b32.xlu1 %v2480_v6, %s2401_s5  ;;  %271 = vrot.lane.b32.xlu0 %v2485_v7, %s2401_s5 }
  0x52   :  { %314 = vrot.lane.b32.xlu1 %v2463_v3, %s2402_s6  ;;  %312 = vrot.lane.b32.xlu0 %v2451_v1, %s2402_s6 }
  0x56   :  { %318 = vrot.lane.b32.xlu1 %v2456_v2, %s2402_s6  ;;  %316 = vrot.lane.b32.xlu0 %v2446_v0, %s2402_s6 }
  0x5a   :  { %322 = vrot.lane.b32.xlu1 %v2468_v4, %s2402_s6  ;;  %320 = vrot.lane.b32.xlu0 %v2475_v5, %s2402_s6 }
  0x5e   :  { %326 = vrot.lane.b32.xlu1 %v2480_v6, %s2402_s6  ;;  %324 = vrot.lane.b32.xlu0 %v2485_v7, %s2402_s6 }
  0x62   :  { %367 = vrot.lane.b32.xlu1 %v2463_v3, %s2403_s7  ;;  %365 = vrot.lane.b32.xlu0 %v2451_v1, %s2403_s7 }
  0x66   :  { %371 = vrot.lane.b32.xlu1 %v2456_v2, %s2403_s7  ;;  %369 = vrot.lane.b32.xlu0 %v2446_v0, %s2403_s7 }
  0x6a   :  { %375 = vrot.lane.b32.xlu1 %v2468_v4, %s2403_s7  ;;  %373 = vrot.lane.b32.xlu0 %v2475_v5, %s2403_s7 }
  0x6e   :  { %379 = vrot.lane.b32.xlu1 %v2480_v6, %s2403_s7  ;;  %377 = vrot.lane.b32.xlu0 %v2485_v7, %s2403_s7 }
  0x72   :  { %420 = vrot.lane.b32.xlu1 %v2463_v3, %s2404_s8  ;;  %418 = vrot.lane.b32.xlu0 %v2451_v1, %s2404_s8 }
  0x74   :  { %v52_v17 = vpop.permute.xlu1 %51  ;;  %v48_v18 = vpop.permute.xlu0 %47 }
  0x76   :  { %424 = vrot.lane.b32.xlu1 %v2456_v2, %s2404_s8  ;;  %422 = vrot.lane.b32.xlu0 %v2446_v0, %s2404_s8 }
  0x78   :  { %v54_v19 = vpop.permute.xlu1 %53  ;;  %v50_v20 = vpop.permute.xlu0 %49 }
  0x79   :  { %v65_v21 = vsel %vm63_vm1, %v52_v17, %v54_v19  ;;  %79 = vst.msk [vmem:[#allocation2 + $0x58] sm:$0xff] %vm23_vm0, %v54_v19  ;;  %v64_v22 = vsel %vm63_vm1, %v48_v18, %v50_v20  ;;  %77 = vst.msk [vmem:[#allocation2 + $0x48] sm:$0xff] %vm23_vm0, %v50_v20 }
  0x7a   :  { %428 = vrot.lane.b32.xlu1 %v2468_v4, %s2404_s8  ;;  %426 = vrot.lane.b32.xlu0 %v2475_v5, %s2404_s8  ;;  %v2163_v32 = vpack.c.bf16 %v65_v21, %v64_v22 }
  0x7c   :  { %v58_v23 = vpop.permute.xlu1 %57  ;;  %v56_v24 = vpop.permute.xlu0 %55 }
  0x7d   :  { %81 = vst.msk [vmem:[#allocation2 + $0x68] sm:$0xff] %vm23_vm0, %v58_v23  ;;  %v66_v25 = vsel %vm63_vm1, %v56_v24, %v58_v23 }
  0x7e   :  { %432 = vrot.lane.b32.xlu1 %v2480_v6, %s2404_s8  ;;  %430 = vrot.lane.b32.xlu0 %v2485_v7, %s2404_s8 }
  0x80   :  { %v62_v26 = vpop.permute.xlu1 %61  ;;  %v60_v27 = vpop.permute.xlu0 %59  ;;  %v1605_v28 = vld [vmem:[#allocation2 + $0x48] sm:$0xff]  ;;  %v1607_v29 = vld [vmem:[#allocation2 + $0x58] sm:$0xff] }
  0x81   :  { %83 = vst.msk [vmem:[#allocation2 + $0x78] sm:$0xff] %vm23_vm0, %v62_v26  ;;  %v67_v30 = vsel %vm63_vm1, %v60_v27, %v62_v26  ;;  %v2161_v31 = vpack.c.bf16 %v1607_v29, %v1605_v28  ;;  %vm681_vm1 = vcmask 769024  }
  0x82   :  { %473 = vrot.lane.b32.xlu1 %v2463_v3, %s2405_s11  ;;  %471 = vrot.lane.b32.xlu0 %v2451_v1, %s2405_s11  ;;  %v2167_v43 = vpack.c.bf16 %v67_v30, %v66_v25 }
  0x83   :  { %2162 = vmatprep.subr.bf16.mxu1 %v2161_v31 }
  0x84   :  { %v103_v33 = vpop.permute.xlu1 %102  ;;  %v101_v34 = vpop.permute.xlu0 %100  ;;  %2164 = vmatpush1.bf16.msra.mxu1 %v2163_v32  ;;  %v1609_v39 = vld [vmem:[#allocation2 + $0x68] sm:$0xff] }
  0x85   :  { %130 = vst.msk [vmem:[#allocation2 + $0x88] sm:$0xff] %vm23_vm0, %v103_v33  ;;  %v117_v35 = vsel %vm116_vm2, %v101_v34, %v103_v33 }
  0x86   :  { %951 = vrot.lane.b32.xlu1 %v2463_v3, %s2406_s12  ;;  %475 = vrot.lane.b32.xlu0 %v2446_v0, %s2405_s11 }
  0x88   :  { %v107_v37 = vpop.permute.xlu1 %106  ;;  %v105_v38 = vpop.permute.xlu0 %104  ;;  %v1611_v40 = vld [vmem:[#allocation2 + $0x78] sm:$0xff] }
  0x89   :  { %132 = vst.msk [vmem:[#allocation2 + $0x98] sm:$0xff] %vm23_vm0, %v107_v37  ;;  %v118_v41 = vsel %vm116_vm2, %v105_v38, %v107_v37  ;;  %v2165_v42 = vpack.c.bf16 %v1611_v40, %v1609_v39 }
  0x8a   :  { %957 = vrot.lane.b32.xlu1 %v2456_v2, %s2406_s12  ;;  %953 = vrot.lane.b32.xlu0 %v2583_v36, %s2406_s12  ;;  %v2171_v54 = vpack.c.bf16 %v118_v41, %v117_v35 }
  0x8b   :  { %2166 = vmatprep.subr.bf16.mxu1 %v2165_v42 }
  0x8c   :  { %v111_v45 = vpop.permute.xlu1 %110  ;;  %v109_v46 = vpop.permute.xlu0 %108  ;;  %2168 = vmatpush1.bf16.msra.mxu1 %v2167_v43  ;;  %v1613_v50 = vld [vmem:[#allocation2 + $0x88] sm:$0xff] }
  0x8d   :  { %134 = vst.msk [vmem:[#allocation2 + $0xa8] sm:$0xff] %vm23_vm0, %v111_v45  ;;  %v119_v47 = vsel %vm116_vm2, %v109_v46, %v111_v45 }
  0x8e   :  { %949 = vrot.lane.b32.xlu1 %v2451_v1, %s2406_s12  ;;  %959 = vrot.lane.b32.xlu0 %v2594_v44, %s2406_s12 }
  0x90   :  { %v115_v48 = vpop.permute.xlu1 %114  ;;  %v113_v49 = vpop.permute.xlu0 %112  ;;  %v1615_v51 = vld [vmem:[#allocation2 + $0x98] sm:$0xff] }
  0x91   :  { %136 = vst.msk [vmem:[#allocation2 + $0xb8] sm:$0xff] %vm23_vm0, %v115_v48  ;;  %v120_v52 = vsel %vm116_vm2, %v113_v49, %v115_v48  ;;  %v2169_v53 = vpack.c.bf16 %v1615_v51, %v1613_v50  ;;  %vm1338_vm2 = vcmask 515072  }
  0x92   :  { %963 = vrot.lane.b32.xlu1 %v2468_v4, %s2406_s12  ;;  %955 = vrot.lane.b32.xlu0 %v2446_v0, %s2406_s12  ;;  %v2175_v10 = vpack.c.bf16 %v120_v52, %v119_v47 }
  0x93   :  { %2170 = vmatprep.subr.bf16.mxu1 %v2169_v53 }
  0x94   :  { %v156_v56 = vpop.permute.xlu1 %155  ;;  %v154_v57 = vpop.permute.xlu0 %153  ;;  %2172 = vmatpush1.bf16.msra.mxu1 %v2171_v54  ;;  %v1617_v62 = vld [vmem:[#allocation2 + $0xa8] sm:$0xff] }
  0x95   :  { %183 = vst.msk [vmem:[#allocation2 + $0xc8] sm:$0xff] %vm23_vm0, %v156_v56  ;;  %v170_v58 = vsel %vm169_vm3, %v154_v57, %v156_v56 }
  0x96   :  { %969 = vrot.lane.b32.xlu1 %v2480_v6, %s2406_s12  ;;  %965 = vrot.lane.b32.xlu0 %v2611_v55, %s2406_s12 }
  0x98   :  { %v160_v60 = vpop.permute.xlu1 %159  ;;  %v158_v61 = vpop.permute.xlu0 %157  ;;  %v1619_v63 = vld [vmem:[#allocation2 + $0xb8] sm:$0xff] }
  0x99   :  { %185 = vst.msk [vmem:[#allocation2 + $0xd8] sm:$0xff] %vm23_vm0, %v160_v60  ;;  %v171_v8 = vsel %vm169_vm3, %v158_v61, %v160_v60  ;;  %v2173_v9 = vpack.c.bf16 %v1619_v63, %v1617_v62 }
  0x9a   :  { %961 = vrot.lane.b32.xlu1 %v2475_v5, %s2406_s12  ;;  %971 = vrot.lane.b32.xlu0 %v2622_v59, %s2406_s12  ;;  %v2179_v20 = vpack.c.bf16 %v171_v8, %v170_v58 }
  0x9b   :  { %2174 = vmatprep.subr.bf16.mxu1 %v2173_v9 }
  0x9c   :  { %v164_v11 = vpop.permute.xlu1 %163  ;;  %v162_v12 = vpop.permute.xlu0 %161  ;;  %2176 = vmatpush1.bf16.msra.mxu1 %v2175_v10  ;;  %v1621_v16 = vld [vmem:[#allocation2 + $0xc8] sm:$0xff] }
  0x9d   :  { %187 = vst.msk [vmem:[#allocation2 + $0xe8] sm:$0xff] %vm23_vm0, %v164_v11  ;;  %v172_v13 = vsel %vm169_vm3, %v162_v12, %v164_v11 }
  0x9e   :  { %1024 = vrot.lane.b32.xlu1 %v2463_v3, %s2407_s21  ;;  %967 = vrot.lane.b32.xlu0 %v2485_v7, %s2406_s12 }
  0xa0   :  { %v168_v14 = vpop.permute.xlu1 %167  ;;  %v166_v15 = vpop.permute.xlu0 %165  ;;  %v1623_v17 = vld [vmem:[#allocation2 + $0xd8] sm:$0xff] }
  0xa1   :  { %189 = vst.msk [vmem:[#allocation2 + $0xf8] sm:$0xff] %vm23_vm0, %v168_v14  ;;  %v173_v18 = vsel %vm169_vm3, %v166_v15, %v168_v14  ;;  %v2177_v19 = vpack.c.bf16 %v1623_v17, %v1621_v16  ;;  %vm754_vm3 = vcmask 760832  }
  0xa2   :  { %1030 = vrot.lane.b32.xlu1 %v2456_v2, %s2407_s21  ;;  %1026 = vrot.lane.b32.xlu0 %v2583_v36, %s2407_s21  ;;  %v2183_v30 = vpack.c.bf16 %v173_v18, %v172_v13 }
  0xa3   :  { %2178 = vmatprep.subr.bf16.mxu1 %v2177_v19 }
  0xa4   :  { %v209_v21 = vpop.permute.xlu1 %208  ;;  %v207_v22 = vpop.permute.xlu0 %206  ;;  %2180 = vmatpush1.bf16.msra.mxu1 %v2179_v20  ;;  %v1625_v26 = vld [vmem:[#allocation2 + $0xe8] sm:$0xff] }
  0xa5   :  { %236 = vst.msk [vmem:[#allocation2 + $0x108] sm:$0xff] %vm23_vm0, %v209_v21  ;;  %v223_v23 = vsel %vm222_vm4, %v207_v22, %v209_v21 }
  0xa6   :  { %1022 = vrot.lane.b32.xlu1 %v2451_v1, %s2407_s21  ;;  %1032 = vrot.lane.b32.xlu0 %v2594_v44, %s2407_s21 }
  0xa8   :  { %v213_v24 = vpop.permute.xlu1 %212  ;;  %v211_v25 = vpop.permute.xlu0 %210  ;;  %v1627_v27 = vld [vmem:[#allocation2 + $0xf8] sm:$0xff] }
  0xa9   :  { %238 = vst.msk [vmem:[#allocation2 + $0x118] sm:$0xff] %vm23_vm0, %v213_v24  ;;  %v224_v28 = vsel %vm222_vm4, %v211_v25, %v213_v24  ;;  %v2181_v29 = vpack.c.bf16 %v1627_v27, %v1625_v26 }
  0xaa   :  { %1036 = vrot.lane.b32.xlu1 %v2468_v4, %s2407_s21  ;;  %1028 = vrot.lane.b32.xlu0 %v2446_v0, %s2407_s21  ;;  %v2187_v41 = vpack.c.bf16 %v224_v28, %v223_v23 }
  0xab   :  { %2182 = vmatprep.subr.bf16.mxu1 %v2181_v29 }
  0xac   :  { %v217_v31 = vpop.permute.xlu1 %216  ;;  %v215_v32 = vpop.permute.xlu0 %214  ;;  %2184 = vmatpush1.bf16.msra.mxu1 %v2183_v30  ;;  %v1629_v37 = vld [vmem:[#allocation2 + $0x108] sm:$0xff] }
  0xad   :  { %240 = vst.msk [vmem:[#allocation2 + $0x128] sm:$0xff] %vm23_vm0, %v217_v31  ;;  %v225_v33 = vsel %vm222_vm4, %v215_v32, %v217_v31 }
  0xae   :  { %1042 = vrot.lane.b32.xlu1 %v2480_v6, %s2407_s21  ;;  %1038 = vrot.lane.b32.xlu0 %v2611_v55, %s2407_s21 }
  0xb0   :  { %v221_v34 = vpop.permute.xlu1 %220  ;;  %v219_v35 = vpop.permute.xlu0 %218  ;;  %v1631_v38 = vld [vmem:[#allocation2 + $0x118] sm:$0xff] }
  0xb1   :  { %242 = vst.msk [vmem:[#allocation2 + $0x138] sm:$0xff] %vm23_vm0, %v221_v34  ;;  %v226_v39 = vsel %vm222_vm4, %v219_v35, %v221_v34  ;;  %v2185_v40 = vpack.c.bf16 %v1631_v38, %v1629_v37  ;;  %vm1411_vm4 = vcmask 506880  }
  0xb2   :  { %1034 = vrot.lane.b32.xlu1 %v2475_v5, %s2407_s21  ;;  %1044 = vrot.lane.b32.xlu0 %v2622_v59, %s2407_s21  ;;  %v2191_v52 = vpack.c.bf16 %v226_v39, %v225_v33 }
  0xb3   :  { %2186 = vmatprep.subr.bf16.mxu1 %v2185_v40 }
  0xb4   :  { %v262_v42 = vpop.permute.xlu1 %261  ;;  %v260_v43 = vpop.permute.xlu0 %259  ;;  %2188 = vmatpush1.bf16.msra.mxu1 %v2187_v41  ;;  %v1633_v48 = vld [vmem:[#allocation2 + $0x128] sm:$0xff] }
  0xb5   :  { %289 = vst.msk [vmem:[#allocation2 + $0x148] sm:$0xff] %vm23_vm0, %v262_v42  ;;  %v276_v45 = vsel %vm275_vm5, %v260_v43, %v262_v42 }
  0xb6   :  { %477 = vrot.lane.b32.xlu1 %v2456_v2, %s2405_s11  ;;  %1040 = vrot.lane.b32.xlu0 %v2485_v7, %s2407_s21  ;;  %s2419_s21 = smov 80  }
  0xb8   :  { %v266_v46 = vpop.permute.xlu1 %265  ;;  %v264_v47 = vpop.permute.xlu0 %263  ;;  %v1635_v49 = vld [vmem:[#allocation2 + $0x138] sm:$0xff] }
  0xb9   :  { %291 = vst.msk [vmem:[#allocation2 + $0x158] sm:$0xff] %vm23_vm0, %v266_v46  ;;  %v277_v50 = vsel %vm275_vm5, %v264_v47, %v266_v46  ;;  %v2189_v51 = vpack.c.bf16 %v1635_v49, %v1633_v48  ;;  %v2757_v48 = vld [vmem:[%s3361_s0] sm:$0xff] }
  0xba   :  { %1099 = vrot.lane.b32.xlu1 %v2583_v36, %s2408_s22  ;;  %1097 = vrot.lane.b32.xlu0 %v2463_v3, %s2408_s22  ;;  %v2195_v8 = vpack.c.bf16 %v277_v50, %v276_v45 }
  0xbb   :  { %2190 = vmatprep.subr.bf16.mxu1 %v2189_v51 }
  0xbc   :  { %v270_v53 = vpop.permute.xlu1 %269  ;;  %v268_v54 = vpop.permute.xlu0 %267  ;;  %2192 = vmatpush1.bf16.msra.mxu1 %v2191_v52  ;;  %v1637_v60 = vld [vmem:[#allocation2 + $0x148] sm:$0xff] }
  0xbd   :  { %293 = vst.msk [vmem:[#allocation2 + $0x168] sm:$0xff] %vm23_vm0, %v270_v53  ;;  %v278_v56 = vsel %vm275_vm5, %v268_v54, %v270_v53 }
  0xbe   :  { %1105 = vrot.lane.b32.xlu1 %v2594_v44, %s2408_s22  ;;  %1103 = vrot.lane.b32.xlu0 %v2456_v2, %s2408_s22 }
  0xc0   :  { %v274_v57 = vpop.permute.xlu1 %273  ;;  %v272_v58 = vpop.permute.xlu0 %271  ;;  %v1639_v61 = vld [vmem:[#allocation2 + $0x158] sm:$0xff] }
  0xc1   :  { %295 = vst.msk [vmem:[#allocation2 + $0x178] sm:$0xff] %vm23_vm0, %v274_v57  ;;  %v279_v62 = vsel %vm275_vm5, %v272_v58, %v274_v57  ;;  %v2193_v63 = vpack.c.bf16 %v1639_v61, %v1637_v60  ;;  %v2768_v57 = vld [vmem:[%s3361_s0 + $0x38] sm:$0xff]  ;;  %v2773_v58 = vld [vmem:[%s3361_s0 + $0x30] sm:$0xff]  ;;  %vm827_vm5 = vcmask 752640  }
  0xc2   :  { %1101 = vrot.lane.b32.xlu1 %v2446_v0, %s2408_s22  ;;  %1095 = vrot.lane.b32.xlu0 %v2451_v1, %s2408_s22  ;;  %v2199_v18 = vpack.c.bf16 %v279_v62, %v278_v56  ;;  %v1582_v62 = vld [vmem:[%s3362_s1] sm:$0xff] }
  0xc3   :  { %2194 = vmatprep.subr.bf16.mxu1 %v2193_v63 }
  0xc4   :  { %v315_v9 = vpop.permute.xlu1 %314  ;;  %v313_v10 = vpop.permute.xlu0 %312  ;;  %2196 = vmatpush1.bf16.msra.mxu1 %v2195_v8  ;;  %v1641_v14 = vld [vmem:[#allocation2 + $0x168] sm:$0xff]  ;;  %v2787_v8 = vld [vmem:[%s3361_s0 + $0x50] sm:$0xff] }
  0xc5   :  { %342 = vst.msk [vmem:[#allocation2 + $0x188] sm:$0xff] %vm23_vm0, %v315_v9  ;;  %v329_v11 = vsel %vm328_vm6, %v313_v10, %v315_v9  ;;  %v2792_v9 = vld [vmem:[%s3361_s0 + $0x48] sm:$0xff] }
  0xc6   :  { %481 = vrot.lane.b32.xlu1 %v2468_v4, %s2405_s11  ;;  %479 = vrot.lane.b32.xlu0 %v2475_v5, %s2405_s11 }
  0xc8   :  { %v319_v12 = vpop.permute.xlu1 %318  ;;  %v317_v13 = vpop.permute.xlu0 %316  ;;  %v1643_v15 = vld [vmem:[#allocation2 + $0x178] sm:$0xff] }
  0xc9   :  { %344 = vst.msk [vmem:[#allocation2 + $0x198] sm:$0xff] %vm23_vm0, %v319_v12  ;;  %v330_v16 = vsel %vm328_vm6, %v317_v13, %v319_v12  ;;  %v2197_v17 = vpack.c.bf16 %v1643_v15, %v1641_v14 }
  0xca   :  { %485 = vrot.lane.b32.xlu1 %v2480_v6, %s2405_s11  ;;  %483 = vrot.lane.b32.xlu0 %v2485_v7, %s2405_s11  ;;  %v2203_v28 = vpack.c.bf16 %v330_v16, %v329_v11 }
  0xcb   :  { %2198 = vmatprep.subr.bf16.mxu1 %v2197_v17 }
  0xcc   :  { %v323_v19 = vpop.permute.xlu1 %322  ;;  %v321_v20 = vpop.permute.xlu0 %320  ;;  %2200 = vmatpush1.bf16.msra.mxu1 %v2199_v18  ;;  %v1645_v24 = vld [vmem:[#allocation2 + $0x188] sm:$0xff] }
  0xcd   :  { %346 = vst.msk [vmem:[#allocation2 + $0x1a8] sm:$0xff] %vm23_vm0, %v323_v19  ;;  %v331_v21 = vsel %vm328_vm6, %v321_v20, %v323_v19 }
  0xce   :  { %1111 = vrot.lane.b32.xlu1 %v2611_v55, %s2408_s22  ;;  %1109 = vrot.lane.b32.xlu0 %v2468_v4, %s2408_s22 }
  0xd0   :  { %v327_v22 = vpop.permute.xlu1 %326  ;;  %v325_v23 = vpop.permute.xlu0 %324  ;;  %v1647_v25 = vld [vmem:[#allocation2 + $0x198] sm:$0xff] }
  0xd1   :  { %348 = vst.msk [vmem:[#allocation2 + $0x1b8] sm:$0xff] %vm23_vm0, %v327_v22  ;;  %v332_v26 = vsel %vm328_vm6, %v325_v23, %v327_v22  ;;  %v2201_v27 = vpack.c.bf16 %v1647_v25, %v1645_v24  ;;  %vm1484_vm6 = vcmask 498688  }
  0xd2   :  { %1117 = vrot.lane.b32.xlu1 %v2622_v59, %s2408_s22  ;;  %1115 = vrot.lane.b32.xlu0 %v2480_v6, %s2408_s22 }
  0xd3   :  { %2202 = vmatprep.subr.bf16.mxu1 %v2201_v27 }
  0xd4   :  { %v368_v29 = vpop.permute.xlu1 %367  ;;  %v366_v4 = vpop.permute.xlu0 %365  ;;  %2204 = vmatpush1.bf16.msra.mxu1 %v2203_v28  ;;  %v1649_v33 = vld [vmem:[#allocation2 + $0x1a8] sm:$0xff] }
  0xd5   :  { %395 = vst.msk [vmem:[#allocation2 + $0x1c8] sm:$0xff] %vm23_vm0, %v368_v29  ;;  %v382_v30 = vsel %vm381_vm7, %v366_v4, %v368_v29  ;;  %v2823_v29 = vld [vmem:[%s3361_s0 + $0x8] sm:$0xff] }
  0xd6   :  { %1113 = vrot.lane.b32.xlu1 %v2485_v7, %s2408_s22  ;;  %1107 = vrot.lane.b32.xlu0 %v2475_v5, %s2408_s22  ;;  %v2207_v7 = vpack.c.bf16 %v332_v26, %v331_v21 }
  0xd8   :  { %v372_v31 = vpop.permute.xlu1 %371  ;;  %v370_v32 = vpop.permute.xlu0 %369  ;;  %v1651_v6 = vld [vmem:[#allocation2 + $0x1b8] sm:$0xff] }
  0xd9   :  { %397 = vst.msk [vmem:[#allocation2 + $0x1d8] sm:$0xff] %vm23_vm0, %v372_v31  ;;  %v383_v34 = vsel %vm381_vm7, %v370_v32, %v372_v31  ;;  %v2205_v35 = vpack.c.bf16 %v1651_v6, %v1649_v33 }
  0xda   :  { %526 = vrot.lane.b32.xlu1 %v2463_v3, %s2409_s23  ;;  %524 = vrot.lane.b32.xlu0 %v2451_v1, %s2409_s23 }
  0xdb   :  { %2206 = vmatprep.subr.bf16.mxu1 %v2205_v35 }
  0xdc   :  { %v376_v37 = vpop.permute.xlu1 %375  ;;  %v374_v5 = vpop.permute.xlu0 %373  ;;  %2208 = vmatpush1.bf16.msra.mxu1 %v2207_v7  ;;  %v1653_v41 = vld [vmem:[#allocation2 + $0x1c8] sm:$0xff] }
  0xdd   :  { %399 = vst.msk [vmem:[#allocation2 + $0x1e8] sm:$0xff] %vm23_vm0, %v376_v37  ;;  %v384_v38 = vsel %vm381_vm7, %v374_v5, %v376_v37 }
  0xde   :  { %530 = vrot.lane.b32.xlu1 %v2456_v2, %s2409_s23  ;;  %528 = vrot.lane.b32.xlu0 %v2446_v0, %s2409_s23  ;;  %v2211_v2 = vpack.c.bf16 %v383_v34, %v382_v30  ;;  %v2741_v0 = vld [vmem:[%s3361_s0 + $0x20] sm:$0xff] }
  0xe0   :  { %v380_v39 = vpop.permute.xlu1 %379  ;;  %v378_v40 = vpop.permute.xlu0 %377  ;;  %v1655_v42 = vld [vmem:[#allocation2 + $0x1d8] sm:$0xff] }
  0xe1   :  { %401 = vst.msk [vmem:[#allocation2 + $0x1f8] sm:$0xff] %vm23_vm0, %v380_v39  ;;  %v385_v1 = vsel %vm381_vm7, %v378_v40, %v380_v39  ;;  %v2209_v43 = vpack.c.bf16 %v1655_v42, %v1653_v41  ;;  %vm900_vm7 = vcmask 654336  }
  0xe2   :  { %1172 = vrot.lane.b32.xlu1 %v2583_v36, %s2410_s24  ;;  %1170 = vrot.lane.b32.xlu0 %v2463_v3, %s2410_s24  ;;  %v2752_v3 = vld [vmem:[%s3361_s0 + $0x18] sm:$0xff]  ;;  %v2215_v56 = vpack.c.bf16 %v385_v1, %v384_v38 }
  0xe3   :  { %2210 = vmatprep.subr.bf16.mxu1 %v2209_v43 }
  0xe4   :  { %v421_v45 = vpop.permute.xlu1 %420  ;;  %v419_v46 = vpop.permute.xlu0 %418  ;;  %2212 = vmatpush1.bf16.msra.mxu1 %v2211_v2  ;;  %v1657_v51 = vld [vmem:[#allocation2 + $0x1e8] sm:$0xff] }
  0xe5   :  { %448 = vst.msk [vmem:[#allocation2 + $0x208] sm:$0xff] %vm23_vm0, %v421_v45  ;;  %v435_v47 = vsel %vm434_vm8, %v419_v46, %v421_v45 }
  0xe6   :  { %1178 = vrot.lane.b32.xlu1 %v2594_v44, %s2410_s24  ;;  %1176 = vrot.lane.b32.xlu0 %v2741_v0, %s2410_s24 }
  0xe8   :  { %v425_v49 = vpop.permute.xlu1 %424  ;;  %v423_v50 = vpop.permute.xlu0 %422  ;;  %v1659_v52 = vld [vmem:[#allocation2 + $0x1f8] sm:$0xff] }
  0xe9   :  { %450 = vst.msk [vmem:[#allocation2 + $0x218] sm:$0xff] %vm23_vm0, %v425_v49  ;;  %v436_v53 = vsel %vm434_vm8, %v423_v50, %v425_v49  ;;  %v2213_v54 = vpack.c.bf16 %v1659_v52, %v1657_v51 }
  0xea   :  { %1174 = vrot.lane.b32.xlu1 %v2752_v3, %s2410_s24  ;;  %1168 = vrot.lane.b32.xlu0 %v2757_v48, %s2410_s24  ;;  %v2219_v16 = vpack.c.bf16 %v436_v53, %v435_v47 }
  0xeb   :  { %2214 = vmatprep.subr.bf16.mxu1 %v2213_v54 }
  0xec   :  { %v429_v60 = vpop.permute.xlu1 %428  ;;  %v427_v61 = vpop.permute.xlu0 %426  ;;  %2216 = vmatpush1.bf16.msra.mxu1 %v2215_v56  ;;  %v1661_v12 = vld [vmem:[#allocation2 + $0x208] sm:$0xff] }
  0xed   :  { %452 = vst.msk [vmem:[#allocation2 + $0x228] sm:$0xff] %vm23_vm0, %v429_v60  ;;  %v437_v63 = vsel %vm434_vm8, %v427_v61, %v429_v60 }
  0xee   :  { %534 = vrot.lane.b32.xlu1 %v2768_v57, %s2409_s23  ;;  %532 = vrot.lane.b32.xlu0 %v2773_v58, %s2409_s23 }
  0xef   :  { %1880 = vmatmul.mubr.f32.vlgmr.msra.gmra.mrb[0].mxu1 %v1582_v62 }
  0xf0   :  { %v433_v10 = vpop.permute.xlu1 %432  ;;  %v431_v11 = vpop.permute.xlu0 %430  ;;  %v1663_v13 = vld [vmem:[#allocation2 + $0x218] sm:$0xff] }
  0xf1   :  { %454 = vst.msk [vmem:[#allocation2 + $0x238] sm:$0xff] %vm23_vm0, %v433_v10  ;;  %v438_v14 = vsel %vm434_vm8, %v431_v11, %v433_v10  ;;  %v2217_v15 = vpack.c.bf16 %v1663_v13, %v1661_v12  ;;  %vm1557_vm8 = vcmask 490496  }
  0xf2   :  { %538 = vrot.lane.b32.xlu1 %v2787_v8, %s2409_s23  ;;  %536 = vrot.lane.b32.xlu0 %v2792_v9, %s2409_s23  ;;  %v2223_v25 = vpack.c.bf16 %v438_v14, %v437_v63  ;;  %s2414_s23 = smov 63  }
  0xf3   :  { %2218 = vmatprep.subr.bf16.mxu1 %v2217_v15 }
  0xf4   :  { %v474_v17 = vpop.permute.xlu1 %473  ;;  %v472_v18 = vpop.permute.xlu0 %471  ;;  %2220 = vmatpush1.bf16.msra.mxu1 %v2219_v16  ;;  %v1665_v22 = vld [vmem:[#allocation2 + $0x228] sm:$0xff] }
  0xf5   :  { %501 = vst.msk [vmem:[#allocation2 + $0x248] sm:$0xff] %vm23_vm0, %v474_v17  ;;  %v2802_v19 = vsel %vm487_vm9, %v472_v18, %v474_v17 }
  0xf6   :  { %1184 = vrot.lane.b32.xlu1 %v2611_v55, %s2410_s24  ;;  %1182 = vrot.lane.b32.xlu0 %v2768_v57, %s2410_s24 }
  0xf8   :  { %v952_v20 = vpop.permute.xlu1 %951  ;;  %v2808_v21 = vpop.permute.xlu0 %475  ;;  %v1667_v23 = vld [vmem:[#allocation2 + $0x238] sm:$0xff] }
  0xf9   :  { %v2221_v24 = vpack.c.bf16 %v1667_v23, %v1665_v22 }
  0xfa   :  { %1190 = vrot.lane.b32.xlu1 %v2622_v59, %s2410_s24  ;;  %1188 = vrot.lane.b32.xlu0 %v2787_v8, %s2410_s24 }
  0xfb   :  { %2222 = vmatprep.subr.bf16.mxu1 %v2221_v24 }
  0xfc   :  { %v958_v26 = vpop.permute.xlu1 %957  ;;  %v954_v27 = vpop.permute.xlu0 %953  ;;  %2224 = vmatpush1.bf16.msra.mxu1 %v2223_v25 }
  0xfd   :  { %v975_v28 = vsel %vm973_vm10, %v952_v20, %v954_v27 }
  0xfe   :  { %991 = vst.msk [vmem:[#allocation2 + $0x408] sm:$0xff] %vm23_vm0, %v975_v28  ;;  %1186 = vrot.lane.b32.xlu1 %v2792_v9, %s2410_s24  ;;  %1180 = vrot.lane.b32.xlu0 %v2773_v58, %s2410_s24 }
 0x100   :  { %v950_v4 = vpop.permute.xlu1 %949  ;;  %v960_v30 = vpop.permute.xlu0 %959 }
 0x101   :  { %v974_v31 = vsel %vm973_vm10, %v950_v4, %v952_v20  ;;  %v977_v32 = vsel %vm973_vm10, %v958_v26, %v960_v30 }
 0x102   :  { %993 = vst.msk [vmem:[#allocation2 + $0x418] sm:$0xff] %vm23_vm0, %v977_v32  ;;  %588 = vrot.lane.b32.xlu1 %v2583_v36, %s2411_s16  ;;  %586 = vrot.lane.b32.xlu0 %v2823_v29, %s2411_s16 }
 0x104   :  { %v964_v33 = vpop.permute.xlu1 %963  ;;  %v956_v6 = vpop.permute.xlu0 %955 }
 0x105   :  { %v976_v34 = vsel %vm973_vm10, %v956_v6, %v958_v26  ;;  %v1725_v5 = vld [vmem:[#allocation2 + $0x408] sm:$0xff] }
 0x106   :  { %594 = vrot.lane.b32.xlu1 %v2594_v44, %s2411_s16  ;;  %592 = vrot.lane.b32.xlu0 %v2741_v0, %s2411_s16  ;;  %v2283_v40 = vpack.c.bf16 %v976_v34, %v974_v31  ;;  %v1669_v6 = vld [vmem:[#allocation2 + $0x248] sm:$0xff] }
 0x108   :  { %v970_v35 = vpop.permute.xlu1 %969  ;;  %v966_v7 = vpop.permute.xlu0 %965 }
 0x109   :  { %v979_v37 = vsel %vm973_vm10, %v964_v33, %v966_v7  ;;  %v1727_v38 = vld [vmem:[#allocation2 + $0x418] sm:$0xff] }
 0x10a   :  { %995 = vst.msk [vmem:[#allocation2 + $0x428] sm:$0xff] %vm23_vm0, %v979_v37  ;;  %590 = vrot.lane.b32.xlu1 %v2752_v3, %s2411_s16  ;;  %584 = vrot.lane.b32.xlu0 %v2757_v48, %s2411_s16  ;;  %v2281_v39 = vpack.c.bf16 %v1727_v38, %v1725_v5  ;;  %v2915_v5 = vld [vmem:[%s3361_s0 + $0x28] sm:$0xff] }
 0x10c   :  { %v962_v41 = vpop.permute.xlu1 %961  ;;  %2282 = vmatprep.subr.bf16.mxu0 %v2281_v39  ;;  %v972_v42 = vpop.permute.xlu0 %971 }
 0x10d   :  { %v978_v1 = vsel %vm973_vm10, %v962_v41, %v964_v33  ;;  %v981_v43 = vsel %vm973_vm10, %v970_v35, %v972_v42  ;;  %2284 = vmatpush1.bf16.msra.mxu0 %v2283_v40 }
 0x10e   :  { %997 = vst.msk [vmem:[#allocation2 + $0x438] sm:$0xff] %vm23_vm0, %v981_v43  ;;  %1245 = vrot.lane.b32.xlu1 %v2583_v36, %s2412_s17  ;;  %1243 = vrot.lane.b32.xlu0 %v2823_v29, %s2412_s17 }
 0x110   :  { %v1025_v2 = vpop.permute.xlu1 %1024  ;;  %v968_v45 = vpop.permute.xlu0 %967 }
 0x111   :  { %v980_v46 = vsel %vm973_vm10, %v968_v45, %v970_v35  ;;  %v1729_v51 = vld [vmem:[#allocation2 + $0x428] sm:$0xff] }
 0x112   :  { %1251 = vrot.lane.b32.xlu1 %v2594_v44, %s2412_s17  ;;  %1249 = vrot.lane.b32.xlu0 %v2741_v0, %s2412_s17  ;;  %v2287_v44 = vpack.c.bf16 %v980_v46, %v978_v1 }
 0x114   :  { %v1031_v47 = vpop.permute.xlu1 %1030  ;;  %v1027_v49 = vpop.permute.xlu0 %1026 }
 0x115   :  { %v1048_v50 = vsel %vm1046_vm11, %v1025_v2, %v1027_v49  ;;  %v1731_v36 = vld [vmem:[#allocation2 + $0x438] sm:$0xff] }
 0x116   :  { %1064 = vst.msk [vmem:[#allocation2 + $0x448] sm:$0xff] %vm23_vm0, %v1048_v50  ;;  %1247 = vrot.lane.b32.xlu1 %v2752_v3, %s2412_s17  ;;  %1241 = vrot.lane.b32.xlu0 %v2757_v48, %s2412_s17  ;;  %v2285_v52 = vpack.c.bf16 %v1731_v36, %v1729_v51 }
 0x118   :  { %v1023_v53 = vpop.permute.xlu1 %1022  ;;  %2286 = vmatprep.subr.bf16.mxu0 %v2285_v52  ;;  %v1033_v54 = vpop.permute.xlu0 %1032 }
 0x119   :  { %v1047_v56 = vsel %vm1046_vm11, %v1023_v53, %v1025_v2  ;;  %v1050_v60 = vsel %vm1046_vm11, %v1031_v47, %v1033_v54  ;;  %2288 = vmatpush1.bf16.msra.mxu0 %v2287_v44 }
 0x11a   :  { %1066 = vst.msk [vmem:[#allocation2 + $0x458] sm:$0xff] %vm23_vm0, %v1050_v60  ;;  %600 = vrot.lane.b32.xlu1 %v2611_v55, %s2411_s16  ;;  %598 = vrot.lane.b32.xlu0 %v2768_v57, %s2411_s16 }
 0x11c   :  { %v1037_v61 = vpop.permute.xlu1 %1036  ;;  %v1029_v62 = vpop.permute.xlu0 %1028 }
 0x11d   :  { %v1049_v63 = vsel %vm1046_vm11, %v1029_v62, %v1031_v47  ;;  %v1733_v13 = vld [vmem:[#allocation2 + $0x448] sm:$0xff] }
 0x11e   :  { %606 = vrot.lane.b32.xlu1 %v2622_v59, %s2411_s16  ;;  %604 = vrot.lane.b32.xlu0 %v2787_v8, %s2411_s16  ;;  %v2291_v16 = vpack.c.bf16 %v1049_v63, %v1047_v56  ;;  %v2950_v63 = vld [vmem:[%s3361_s0 + $0x40] sm:$0xff] }
 0x120   :  { %v1043_v10 = vpop.permute.xlu1 %1042  ;;  %v1039_v11 = vpop.permute.xlu0 %1038 }
 0x121   :  { %v1052_v12 = vsel %vm1046_vm11, %v1037_v61, %v1039_v11  ;;  %v1735_v14 = vld [vmem:[#allocation2 + $0x458] sm:$0xff] }
 0x122   :  { %1068 = vst.msk [vmem:[#allocation2 + $0x468] sm:$0xff] %vm23_vm0, %v1052_v12  ;;  %602 = vrot.lane.b32.xlu1 %v2792_v9, %s2411_s16  ;;  %596 = vrot.lane.b32.xlu0 %v2773_v58, %s2411_s16  ;;  %v2289_v15 = vpack.c.bf16 %v1735_v14, %v1733_v13  ;;  %v2961_v14 = vld [vmem:[%s3361_s0 + $0x58] sm:$0xff] }
 0x124   :  { %v1035_v17 = vpop.permute.xlu1 %1034  ;;  %2290 = vmatprep.subr.bf16.mxu0 %v2289_v15  ;;  %v1045_v18 = vpop.permute.xlu0 %1044 }
 0x125   :  { %v1051_v20 = vsel %vm1046_vm11, %v1035_v17, %v1037_v61  ;;  %v1054_v22 = vsel %vm1046_vm11, %v1043_v10, %v1045_v18  ;;  %2292 = vmatpush1.bf16.msra.mxu0 %v2291_v16 }
 0x126   :  { %1070 = vst.msk [vmem:[#allocation2 + $0x478] sm:$0xff] %vm23_vm0, %v1054_v22  ;;  %1257 = vrot.lane.b32.xlu1 %v2611_v55, %s2412_s17  ;;  %1255 = vrot.lane.b32.xlu0 %v2768_v57, %s2412_s17 }
 0x128   :  { %v478_v23 = vpop.permute.xlu1 %477  ;;  %v1041_v24 = vpop.permute.xlu0 %1040 }
 0x129   :  { %v489_v25 = vsel %vm487_vm9, %v2808_v21, %v478_v23  ;;  %503 = vst.msk [vmem:[#allocation2 + $0x258] sm:$0xff] %vm23_vm0, %v478_v23  ;;  %v1053_v26 = vsel %vm1046_vm11, %v1041_v24, %v1043_v10  ;;  %v1737_v4 = vld [vmem:[#allocation2 + $0x468] sm:$0xff] }
 0x12a   :  { %1263 = vrot.lane.b32.xlu1 %v2622_v59, %s2412_s17  ;;  %1261 = vrot.lane.b32.xlu0 %v2787_v8, %s2412_s17  ;;  %v2903_v59 = vld [vmem:[%s3361_s0 + $0x10] sm:$0xff]  ;;  %v2295_v31 = vpack.c.bf16 %v1053_v26, %v1051_v20  ;;  %v2227_v37 = vpack.c.bf16 %v489_v25, %v2802_v19 }
 0x12c   :  { %v1100_v55 = vpop.permute.xlu1 %1099  ;;  %v1098_v27 = vpop.permute.xlu0 %1097 }
 0x12d   :  { %v1121_v28 = vsel %vm1119_vm12, %v1098_v27, %v1100_v55  ;;  %v1739_v30 = vld [vmem:[#allocation2 + $0x478] sm:$0xff] }
 0x12e   :  { %1137 = vst.msk [vmem:[#allocation2 + $0x488] sm:$0xff] %vm23_vm0, %v1121_v28  ;;  %1259 = vrot.lane.b32.xlu1 %v2792_v9, %s2412_s17  ;;  %1253 = vrot.lane.b32.xlu0 %v2773_v58, %s2412_s17  ;;  %v2293_v21 = vpack.c.bf16 %v1739_v30, %v1737_v4 }
 0x130   :  { %v1106_v32 = vpop.permute.xlu1 %1105  ;;  %2294 = vmatprep.subr.bf16.mxu0 %v2293_v21  ;;  %v1104_v33 = vpop.permute.xlu0 %1103  ;;  %v1671_v34 = vld [vmem:[#allocation2 + $0x258] sm:$0xff] }
 0x131   :  { %v1123_v35 = vsel %vm1119_vm12, %v1104_v33, %v1106_v32  ;;  %v2225_v7 = vpack.c.bf16 %v1671_v34, %v1669_v6  ;;  %2296 = vmatpush1.bf16.msra.mxu0 %v2295_v31 }
 0x132   :  { %1139 = vst.msk [vmem:[#allocation2 + $0x498] sm:$0xff] %vm23_vm0, %v1123_v35  ;;  %661 = vrot.lane.b32.xlu1 %v2903_v59, %s2413_s20  ;;  %659 = vrot.lane.b32.xlu0 %v2823_v29, %s2413_s20 }
 0x133   :  { %2226 = vmatprep.subr.bf16.mxu1 %v2225_v7 }
 0x134   :  { %v1102_v38 = vpop.permute.xlu1 %1101  ;;  %v1096_v39 = vpop.permute.xlu0 %1095  ;;  %2228 = vmatpush1.bf16.msra.mxu1 %v2227_v37 }
 0x135   :  { %v1122_v40 = vsel %vm1119_vm12, %v1102_v38, %v1104_v33  ;;  %v1120_v41 = vsel %vm1119_vm12, %v1096_v39, %v1098_v27  ;;  %v1741_v43 = vld [vmem:[#allocation2 + $0x488] sm:$0xff] }
 0x136   :  { %667 = vrot.lane.b32.xlu1 %v2915_v5, %s2413_s20  ;;  %665 = vrot.lane.b32.xlu0 %v2741_v0, %s2413_s20  ;;  %v2299_v46 = vpack.c.bf16 %v1122_v40, %v1120_v41 }
 0x138   :  { %v482_v19 = vpop.permute.xlu1 %481  ;;  %v480_v42 = vpop.permute.xlu0 %479 }
 0x139   :  { %505 = vst.msk [vmem:[#allocation2 + $0x268] sm:$0xff] %vm23_vm0, %v482_v19  ;;  %v490_v1 = vsel %vm487_vm9, %v480_v42, %v482_v19  ;;  %v1743_v2 = vld [vmem:[#allocation2 + $0x498] sm:$0xff] }
 0x13a   :  { %663 = vrot.lane.b32.xlu1 %v2752_v3, %s2413_s20  ;;  %657 = vrot.lane.b32.xlu0 %v2757_v48, %s2413_s20  ;;  %v2297_v45 = vpack.c.bf16 %v1743_v2, %v1741_v43 }
 0x13c   :  { %v486_v47 = vpop.permute.xlu1 %485  ;;  %2298 = vmatprep.subr.bf16.mxu0 %v2297_v45  ;;  %v484_v49 = vpop.permute.xlu0 %483 }
 0x13d   :  { %507 = vst.msk [vmem:[#allocation2 + $0x278] sm:$0xff] %vm23_vm0, %v486_v47  ;;  %v491_v50 = vsel %vm487_vm9, %v484_v49, %v486_v47  ;;  %2300 = vmatpush1.bf16.msra.mxu0 %v2299_v46  ;;  %vm1808_vm9 = vcmask 261120  }
 0x13e   :  { %1318 = vrot.lane.b32.xlu1 %v2903_v59, %s2414_s23  ;;  %1316 = vrot.lane.b32.xlu0 %v2823_v29, %s2414_s23  ;;  %v2231_v62 = vpack.c.bf16 %v491_v50, %v490_v1 }
 0x140   :  { %v1112_v51 = vpop.permute.xlu1 %1111  ;;  %v1110_v36 = vpop.permute.xlu0 %1109  ;;  %v1673_v54 = vld [vmem:[#allocation2 + $0x268] sm:$0xff] }
 0x141   :  { %v1125_v52 = vsel %vm1119_vm12, %v1110_v36, %v1112_v51 }
 0x142   :  { %1141 = vst.msk [vmem:[#allocation2 + $0x4a8] sm:$0xff] %vm23_vm0, %v1125_v52  ;;  %1324 = vrot.lane.b32.xlu1 %v2915_v5, %s2414_s23  ;;  %1322 = vrot.lane.b32.xlu0 %v2741_v0, %s2414_s23 }
 0x144   :  { %v1118_v44 = vpop.permute.xlu1 %1117  ;;  %v1116_v53 = vpop.permute.xlu0 %1115  ;;  %v1675_v56 = vld [vmem:[#allocation2 + $0x278] sm:$0xff] }
 0x145   :  { %v1127_v60 = vsel %vm1119_vm12, %v1116_v53, %v1118_v44  ;;  %v2229_v61 = vpack.c.bf16 %v1675_v56, %v1673_v54 }
 0x146   :  { %1143 = vst.msk [vmem:[#allocation2 + $0x4b8] sm:$0xff] %vm23_vm0, %v1127_v60  ;;  %1320 = vrot.lane.b32.xlu1 %v2752_v3, %s2414_s23  ;;  %1314 = vrot.lane.b32.xlu0 %v2757_v48, %s2414_s23 }
 0x147   :  { %2230 = vmatprep.subr.bf16.mxu1 %v2229_v61 }
 0x148   :  { %v1114_v10 = vpop.permute.xlu1 %1113  ;;  %v1108_v11 = vpop.permute.xlu0 %1107  ;;  %2232 = vmatpush1.bf16.msra.mxu1 %v2231_v62 }
 0x149   :  { %v1126_v12 = vsel %vm1119_vm12, %v1114_v10, %v1116_v53  ;;  %v1124_v13 = vsel %vm1119_vm12, %v1108_v11, %v1110_v36  ;;  %v1745_v18 = vld [vmem:[#allocation2 + $0x4a8] sm:$0xff] }
 0x14a   :  { %673 = vrot.lane.b32.xlu1 %v2950_v63, %s2413_s20  ;;  %671 = vrot.lane.b32.xlu0 %v2768_v57, %s2413_s20  ;;  %v2303_v23 = vpack.c.bf16 %v1126_v12, %v1124_v13 }
 0x14c   :  { %v527_v15 = vpop.permute.xlu1 %526  ;;  %v525_v16 = vpop.permute.xlu0 %524 }
 0x14d   :  { %553 = vst.msk [vmem:[#allocation2 + $0x288] sm:$0xff] %vm23_vm0, %v527_v15  ;;  %v540_v17 = vsel %vm23_vm0, %v525_v16, %v527_v15  ;;  %v1747_v20 = vld [vmem:[#allocation2 + $0x4b8] sm:$0xff] }
 0x14e   :  { %679 = vrot.lane.b32.xlu1 %v2961_v14, %s2413_s20  ;;  %677 = vrot.lane.b32.xlu0 %v2787_v8, %s2413_s20  ;;  %v2301_v22 = vpack.c.bf16 %v1747_v20, %v1745_v18 }
 0x150   :  { %v531_v24 = vpop.permute.xlu1 %530  ;;  %2302 = vmatprep.subr.bf16.mxu0 %v2301_v22  ;;  %v529_v25 = vpop.permute.xlu0 %528 }
 0x151   :  { %555 = vst.msk [vmem:[#allocation2 + $0x298] sm:$0xff] %vm23_vm0, %v531_v24  ;;  %v541_v26 = vsel %vm23_vm0, %v529_v25, %v531_v24  ;;  %2304 = vmatpush1.bf16.msra.mxu0 %v2303_v23 }
 0x152   :  { %675 = vrot.lane.b32.xlu1 %v2792_v9, %s2413_s20  ;;  %669 = vrot.lane.b32.xlu0 %v2773_v58, %s2413_s20  ;;  %v2235_v6 = vpack.c.bf16 %v541_v26, %v540_v17 }
 0x154   :  { %v1173_v55 = vpop.permute.xlu1 %1172  ;;  %v1171_v27 = vpop.permute.xlu0 %1170  ;;  %v1677_v21 = vld [vmem:[#allocation2 + $0x288] sm:$0xff] }
 0x155   :  { %v1194_v28 = vsel %vm1192_vm13, %v1171_v27, %v1173_v55 }
 0x156   :  { %1210 = vst.msk [vmem:[#allocation2 + $0x4c8] sm:$0xff] %vm23_vm0, %v1194_v28  ;;  %1330 = vrot.lane.b32.xlu1 %v2950_v63, %s2414_s23  ;;  %1328 = vrot.lane.b32.xlu0 %v2768_v57, %s2414_s23 }
 0x158   :  { %v1179_v4 = vpop.permute.xlu1 %1178  ;;  %v1177_v30 = vpop.permute.xlu0 %1176  ;;  %v1679_v31 = vld [vmem:[#allocation2 + $0x298] sm:$0xff] }
 0x159   :  { %v1196_v32 = vsel %vm1192_vm13, %v1177_v30, %v1179_v4  ;;  %v2233_v33 = vpack.c.bf16 %v1679_v31, %v1677_v21 }
 0x15a   :  { %1212 = vst.msk [vmem:[#allocation2 + $0x4d8] sm:$0xff] %vm23_vm0, %v1196_v32  ;;  %1336 = vrot.lane.b32.xlu1 %v2961_v14, %s2414_s23  ;;  %1334 = vrot.lane.b32.xlu0 %v2787_v8, %s2414_s23 }
 0x15b   :  { %2234 = vmatprep.subr.bf16.mxu1 %v2233_v33 }
 0x15c   :  { %v1175_v34 = vpop.permute.xlu1 %1174  ;;  %v1169_v35 = vpop.permute.xlu0 %1168  ;;  %2236 = vmatpush1.bf16.msra.mxu1 %v2235_v6 }
 0x15d   :  { %v1195_v7 = vsel %vm1192_vm13, %v1175_v34, %v1177_v30  ;;  %v1193_v37 = vsel %vm1192_vm13, %v1169_v35, %v1171_v27  ;;  %v1749_v41 = vld [vmem:[#allocation2 + $0x4c8] sm:$0xff] }
 0x15e   :  { %1332 = vrot.lane.b32.xlu1 %v2792_v9, %s2414_s23  ;;  %1326 = vrot.lane.b32.xlu0 %v2773_v58, %s2414_s23  ;;  %v2307_v1 = vpack.c.bf16 %v1195_v7, %v1193_v37 }
 0x160   :  { %v535_v38 = vpop.permute.xlu1 %534  ;;  %v533_v39 = vpop.permute.xlu0 %532 }
 0x161   :  { %557 = vst.msk [vmem:[#allocation2 + $0x2a8] sm:$0xff] %vm23_vm0, %v535_v38  ;;  %v542_v40 = vsel %vm23_vm0, %v533_v39, %v535_v38  ;;  %v1751_v19 = vld [vmem:[#allocation2 + $0x4d8] sm:$0xff] }
 0x162   :  { %734 = vrot.lane.b32.xlu1 %v2903_v59, %s2415_s28  ;;  %732 = vrot.lane.b32.xlu0 %v2823_v29, %s2415_s28  ;;  %v2305_v42 = vpack.c.bf16 %v1751_v19, %v1749_v41 }
 0x164   :  { %v539_v43 = vpop.permute.xlu1 %538  ;;  %2306 = vmatprep.subr.bf16.mxu0 %v2305_v42  ;;  %v537_v2 = vpop.permute.xlu0 %536 }
 0x165   :  { %559 = vst.msk [vmem:[#allocation2 + $0x2b8] sm:$0xff] %vm23_vm0, %v539_v43  ;;  %v543_v45 = vsel %vm23_vm0, %v537_v2, %v539_v43  ;;  %2308 = vmatpush1.bf16.msra.mxu0 %v2307_v1  ;;  %v3085_v2 = vld [vmem:[%s3361_s0 + $0x18] sm:$0xff] }
 0x166   :  { %740 = vrot.lane.b32.xlu1 %v2915_v5, %s2415_s28  ;;  %738 = vrot.lane.b32.xlu0 %v2741_v0, %s2415_s28  ;;  %v2239_v54 = vpack.c.bf16 %v543_v45, %v542_v40  ;;  %v3090_v45 = vld [vmem:[%s3361_s0] sm:$0xff] }
 0x168   :  { %v1185_v46 = vpop.permute.xlu1 %1184  ;;  %v1183_v47 = vpop.permute.xlu0 %1182  ;;  %v1681_v36 = vld [vmem:[#allocation2 + $0x2a8] sm:$0xff] }
 0x169   :  { %v1198_v49 = vsel %vm1192_vm13, %v1183_v47, %v1185_v46 }
 0x16a   :  { %1214 = vst.msk [vmem:[#allocation2 + $0x4e8] sm:$0xff] %vm23_vm0, %v1198_v49  ;;  %736 = vrot.lane.b32.xlu1 %v2752_v3, %s2415_s28  ;;  %730 = vrot.lane.b32.xlu0 %v2757_v48, %s2415_s28 }
 0x16c   :  { %v1191_v50 = vpop.permute.xlu1 %1190  ;;  %v1189_v51 = vpop.permute.xlu0 %1188  ;;  %v1683_v52 = vld [vmem:[#allocation2 + $0x2b8] sm:$0xff] }
 0x16d   :  { %v1200_v44 = vsel %vm1192_vm13, %v1189_v51, %v1191_v50  ;;  %v2237_v53 = vpack.c.bf16 %v1683_v52, %v1681_v36 }
 0x16e   :  { %1216 = vst.msk [vmem:[#allocation2 + $0x4f8] sm:$0xff] %vm23_vm0, %v1200_v44  ;;  %1391 = vrot.lane.b32.xlu1 %v2903_v59, %s2416_s29  ;;  %1389 = vrot.lane.b32.xlu0 %v2823_v29, %s2416_s29 }
 0x16f   :  { %2238 = vmatprep.subr.bf16.mxu1 %v2237_v53 }
 0x170   :  { %v1187_v56 = vpop.permute.xlu1 %1186  ;;  %v1181_v60 = vpop.permute.xlu0 %1180  ;;  %2240 = vmatpush1.bf16.msra.mxu1 %v2239_v54 }
 0x171   :  { %v1199_v61 = vsel %vm1192_vm13, %v1187_v56, %v1189_v51  ;;  %v1197_v62 = vsel %vm1192_vm13, %v1181_v60, %v1183_v47  ;;  %v1753_v13 = vld [vmem:[#allocation2 + $0x4e8] sm:$0xff] }
 0x172   :  { %1397 = vrot.lane.b32.xlu1 %v2915_v5, %s2416_s29  ;;  %1395 = vrot.lane.b32.xlu0 %v2741_v0, %s2416_s29  ;;  %v2311_v17 = vpack.c.bf16 %v1199_v61, %v1197_v62 }
 0x174   :  { %v589_v10 = vpop.permute.xlu1 %588  ;;  %v587_v11 = vpop.permute.xlu0 %586 }
 0x175   :  { %v610_v12 = vsel %vm608_vm14, %v587_v11, %v589_v10  ;;  %v1755_v15 = vld [vmem:[#allocation2 + $0x4f8] sm:$0xff] }
 0x176   :  { %626 = vst.msk [vmem:[#allocation2 + $0x2c8] sm:$0xff] %vm23_vm0, %v610_v12  ;;  %1393 = vrot.lane.b32.xlu1 %v2752_v3, %s2416_s29  ;;  %1387 = vrot.lane.b32.xlu0 %v2757_v48, %s2416_s29  ;;  %v2309_v16 = vpack.c.bf16 %v1755_v15, %v1753_v13 }
 0x178   :  { %v595_v18 = vpop.permute.xlu1 %594  ;;  %2310 = vmatprep.subr.bf16.mxu0 %v2309_v16  ;;  %v593_v0 = vpop.permute.xlu0 %592  ;;  %v3119_v16 = vld [vmem:[%s3361_s0 + $0x38] sm:$0xff] }
 0x179   :  { %v612_v20 = vsel %vm608_vm14, %v593_v0, %v595_v18  ;;  %2312 = vmatpush1.bf16.msra.mxu0 %v2311_v17 }
 0x17a   :  { %628 = vst.msk [vmem:[#allocation2 + $0x2d8] sm:$0xff] %vm23_vm0, %v612_v20  ;;  %746 = vrot.lane.b32.xlu1 %v2950_v63, %s2415_s28  ;;  %744 = vrot.lane.b32.xlu0 %v2768_v57, %s2415_s28 }
 0x17c   :  { %v591_v3 = vpop.permute.xlu1 %590  ;;  %v585_v22 = vpop.permute.xlu0 %584 }
 0x17d   :  { %v611_v48 = vsel %vm608_vm14, %v591_v3, %v593_v0  ;;  %v609_v23 = vsel %vm608_vm14, %v585_v22, %v587_v11  ;;  %v1685_v55 = vld [vmem:[#allocation2 + $0x2c8] sm:$0xff]  ;;  %v3130_v3 = vld [vmem:[%s3361_s0 + $0x50] sm:$0xff] }
 0x17e   :  { %752 = vrot.lane.b32.xlu1 %v2961_v14, %s2415_s28  ;;  %750 = vrot.lane.b32.xlu0 %v2787_v8, %s2415_s28  ;;  %v2243_v4 = vpack.c.bf16 %v611_v48, %v609_v23 }
 0x180   :  { %v1246_v24 = vpop.permute.xlu1 %1245  ;;  %v1244_v25 = vpop.permute.xlu0 %1243 }
 0x181   :  { %v1267_v26 = vsel %vm1265_vm15, %v1244_v25, %v1246_v24  ;;  %v1687_v27 = vld [vmem:[#allocation2 + $0x2d8] sm:$0xff] }
 0x182   :  { %1283 = vst.msk [vmem:[#allocation2 + $0x508] sm:$0xff] %vm23_vm0, %v1267_v26  ;;  %748 = vrot.lane.b32.xlu1 %v2792_v9, %s2415_s28  ;;  %742 = vrot.lane.b32.xlu0 %v2773_v58, %s2415_s28  ;;  %v2241_v28 = vpack.c.bf16 %v1687_v27, %v1685_v55  ;;  %v3146_v26 = vld [vmem:[%s3361_s0 + $0x30] sm:$0xff] }
 0x184   :  { %v1252_v30 = vpop.permute.xlu1 %1251  ;;  %v1250_v21 = vpop.permute.xlu0 %1249  ;;  %2242 = vmatprep.subr.bf16.mxu1 %v2241_v28 }
 0x185   :  { %v1269_v31 = vsel %vm1265_vm15, %v1250_v21, %v1252_v30  ;;  %2244 = vmatpush1.bf16.msra.mxu1 %v2243_v4 }
 0x186   :  { %1285 = vst.msk [vmem:[#allocation2 + $0x518] sm:$0xff] %vm23_vm0, %v1269_v31  ;;  %1403 = vrot.lane.b32.xlu1 %v2950_v63, %s2416_s29  ;;  %1401 = vrot.lane.b32.xlu0 %v2768_v57, %s2416_s29 }
 0x188   :  { %v1248_v32 = vpop.permute.xlu1 %1247  ;;  %v1242_v33 = vpop.permute.xlu0 %1241 }
 0x189   :  { %v1268_v6 = vsel %vm1265_vm15, %v1248_v32, %v1250_v21  ;;  %v1266_v34 = vsel %vm1265_vm15, %v1242_v33, %v1244_v25  ;;  %v1757_v38 = vld [vmem:[#allocation2 + $0x508] sm:$0xff] }
 0x18a   :  { %1409 = vrot.lane.b32.xlu1 %v2961_v14, %s2416_s29  ;;  %1407 = vrot.lane.b32.xlu0 %v2787_v8, %s2416_s29  ;;  %v2315_v40 = vpack.c.bf16 %v1268_v6, %v1266_v34  ;;  %v3141_v25 = vld [vmem:[%s3361_s0 + $0x48] sm:$0xff] }
 0x18c   :  { %v601_v35 = vpop.permute.xlu1 %600  ;;  %v599_v7 = vpop.permute.xlu0 %598 }
 0x18d   :  { %v614_v37 = vsel %vm608_vm14, %v599_v7, %v601_v35  ;;  %v1759_v39 = vld [vmem:[#allocation2 + $0x518] sm:$0xff] }
 0x18e   :  { %630 = vst.msk [vmem:[#allocation2 + $0x2e8] sm:$0xff] %vm23_vm0, %v614_v37  ;;  %1405 = vrot.lane.b32.xlu1 %v2792_v9, %s2416_s29  ;;  %1399 = vrot.lane.b32.xlu0 %v2773_v58, %s2416_s29  ;;  %v2313_v57 = vpack.c.bf16 %v1759_v39, %v1757_v38  ;;  %v3074_v58 = vld [vmem:[%s3361_s0 + $0x20] sm:$0xff] }
 0x190   :  { %v607_v41 = vpop.permute.xlu1 %606  ;;  %2314 = vmatprep.subr.bf16.mxu0 %v2313_v57  ;;  %v605_v19 = vpop.permute.xlu0 %604 }
 0x191   :  { %v616_v8 = vsel %vm608_vm14, %v605_v19, %v607_v41  ;;  %2316 = vmatpush1.bf16.msra.mxu0 %v2315_v40 }
 0x192   :  { %632 = vst.msk [vmem:[#allocation2 + $0x2f8] sm:$0xff] %vm23_vm0, %v616_v8  ;;  %807 = vrot.lane.b32.xlu1 %v2903_v59, %s2417_s30  ;;  %805 = vrot.lane.b32.xlu0 %v2823_v29, %s2417_s30  ;;  %v853_v8 = vld [vmem:[%s3361_s0 + $0x8] sm:$0xff]  ;;  %s2420_s0 = smov 60  }
 0x194   :  { %v603_v9 = vpop.permute.xlu1 %602  ;;  %v597_v42 = vpop.permute.xlu0 %596 }
 0x195   :  { %v615_v1 = vsel %vm608_vm14, %v603_v9, %v605_v19  ;;  %v613_v43 = vsel %vm608_vm14, %v597_v42, %v599_v7  ;;  %v1689_v50 = vld [vmem:[#allocation2 + $0x2e8] sm:$0xff] }
 0x196   :  { %813 = vrot.lane.b32.xlu1 %v2915_v5, %s2417_s30  ;;  %811 = vrot.lane.b32.xlu0 %v3074_v58, %s2417_s30  ;;  %v2247_v52 = vpack.c.bf16 %v615_v1, %v613_v43 }
 0x198   :  { %v1258_v46 = vpop.permute.xlu1 %1257  ;;  %v1256_v47 = vpop.permute.xlu0 %1255 }
 0x199   :  { %v1271_v49 = vsel %vm1265_vm15, %v1256_v47, %v1258_v46  ;;  %v1691_v51 = vld [vmem:[#allocation2 + $0x2f8] sm:$0xff] }
 0x19a   :  { %1287 = vst.msk [vmem:[#allocation2 + $0x528] sm:$0xff] %vm23_vm0, %v1271_v49  ;;  %809 = vrot.lane.b32.xlu1 %v3085_v2, %s2417_s30  ;;  %803 = vrot.lane.b32.xlu0 %v3090_v45, %s2417_s30  ;;  %v2245_v36 = vpack.c.bf16 %v1691_v51, %v1689_v50 }
 0x19c   :  { %v1264_v44 = vpop.permute.xlu1 %1263  ;;  %v1262_v53 = vpop.permute.xlu0 %1261  ;;  %2246 = vmatprep.subr.bf16.mxu1 %v2245_v36 }
 0x19d   :  { %v1273_v54 = vsel %vm1265_vm15, %v1262_v53, %v1264_v44  ;;  %2248 = vmatpush1.bf16.msra.mxu1 %v2247_v52 }
 0x19e   :  { %1289 = vst.msk [vmem:[#allocation2 + $0x538] sm:$0xff] %vm23_vm0, %v1273_v54  ;;  %1464 = vrot.lane.b32.xlu1 %v2903_v59, %s2418_s10  ;;  %1462 = vrot.lane.b32.xlu0 %v2823_v29, %s2418_s10 }
 0x1a0   :  { %v1260_v56 = vpop.permute.xlu1 %1259  ;;  %v1254_v60 = vpop.permute.xlu0 %1253 }
 0x1a1   :  { %v1272_v61 = vsel %vm1265_vm15, %v1260_v56, %v1262_v53  ;;  %v1270_v62 = vsel %vm1265_vm15, %v1254_v60, %v1256_v47  ;;  %v1761_v13 = vld [vmem:[#allocation2 + $0x528] sm:$0xff] }
 0x1a2   :  { %1470 = vrot.lane.b32.xlu1 %v2915_v5, %s2418_s10  ;;  %1468 = vrot.lane.b32.xlu0 %v3074_v58, %s2418_s10  ;;  %v2319_v17 = vpack.c.bf16 %v1272_v61, %v1270_v62 }
 0x1a4   :  { %v662_v10 = vpop.permute.xlu1 %661  ;;  %v660_v11 = vpop.permute.xlu0 %659 }
 0x1a5   :  { %v683_v12 = vsel %vm681_vm1, %v660_v11, %v662_v10  ;;  %v1763_v15 = vld [vmem:[#allocation2 + $0x538] sm:$0xff]  ;;  %v1587_v10 = vld [vmem:[%s3362_s1 + $0x28] sm:$0xff] }
 0x1a6   :  { %699 = vst.msk [vmem:[#allocation2 + $0x308] sm:$0xff] %vm23_vm0, %v683_v12  ;;  %1466 = vrot.lane.b32.xlu1 %v3085_v2, %s2418_s10  ;;  %1460 = vrot.lane.b32.xlu0 %v3090_v45, %s2418_s10  ;;  %v2317_v29 = vpack.c.bf16 %v1763_v15, %v1761_v13 }
 0x1a7   :  { %2033 = vmatprep.mubr.f32.mxu0 %v1587_v10 }
 0x1a8   :  { %v668_v18 = vpop.permute.xlu1 %667  ;;  %2318 = vmatprep.subr.bf16.mxu0 %v2317_v29  ;;  %v666_v0 = vpop.permute.xlu0 %665 }
 0x1a9   :  { %v685_v20 = vsel %vm681_vm1, %v666_v0, %v668_v18  ;;  %2320 = vmatpush1.bf16.msra.mxu0 %v2319_v17 }
 0x1aa   :  { %701 = vst.msk [vmem:[#allocation2 + $0x318] sm:$0xff] %vm23_vm0, %v685_v20  ;;  %819 = vrot.lane.b32.xlu1 %v2950_v63, %s2417_s30  ;;  %817 = vrot.lane.b32.xlu0 %v3119_v16, %s2417_s30 }
 0x1ac   :  { %v664_v22 = vpop.permute.xlu1 %663  ;;  %v658_v48 = vpop.permute.xlu0 %657 }
 0x1ad   :  { %v684_v23 = vsel %vm681_vm1, %v664_v22, %v666_v0  ;;  %v682_v24 = vsel %vm681_vm1, %v658_v48, %v660_v11  ;;  %v1693_v4 = vld [vmem:[#allocation2 + $0x308] sm:$0xff] }
 0x1ae   :  { %825 = vrot.lane.b32.xlu1 %v2961_v14, %s2417_s30  ;;  %823 = vrot.lane.b32.xlu0 %v3130_v3, %s2417_s30  ;;  %v2251_v31 = vpack.c.bf16 %v684_v23, %v682_v24 }
 0x1b0   :  { %v1319_v55 = vpop.permute.xlu1 %1318  ;;  %v1317_v27 = vpop.permute.xlu0 %1316 }
 0x1b1   :  { %v1340_v28 = vsel %vm1338_vm2, %v1317_v27, %v1319_v55  ;;  %v1695_v30 = vld [vmem:[#allocation2 + $0x318] sm:$0xff] }
 0x1b2   :  { %1356 = vst.msk [vmem:[#allocation2 + $0x548] sm:$0xff] %vm23_vm0, %v1340_v28  ;;  %821 = vrot.lane.b32.xlu1 %v3141_v25, %s2417_s30  ;;  %815 = vrot.lane.b32.xlu0 %v3146_v26, %s2417_s30  ;;  %v2249_v21 = vpack.c.bf16 %v1695_v30, %v1693_v4  ;;  %v1585_v28 = vld [vmem:[%s3362_s1 + $0x18] sm:$0xff] }
 0x1b4   :  { %v1325_v32 = vpop.permute.xlu1 %1324  ;;  %v1323_v33 = vpop.permute.xlu0 %1322  ;;  %2250 = vmatprep.subr.bf16.mxu1 %v2249_v21 }
 0x1b5   :  { %v1342_v6 = vsel %vm1338_vm2, %v1323_v33, %v1325_v32  ;;  %2252 = vmatpush1.bf16.msra.mxu1 %v2251_v31 }
 0x1b6   :  { %1358 = vst.msk [vmem:[#allocation2 + $0x558] sm:$0xff] %vm23_vm0, %v1342_v6  ;;  %1476 = vrot.lane.b32.xlu1 %v2950_v63, %s2418_s10  ;;  %1474 = vrot.lane.b32.xlu0 %v3119_v16, %s2418_s10 }
 0x1b8   :  { %v1321_v34 = vpop.permute.xlu1 %1320  ;;  %v1315_v35 = vpop.permute.xlu0 %1314 }
 0x1b9   :  { %v1341_v7 = vsel %vm1338_vm2, %v1321_v34, %v1323_v33  ;;  %v1339_v37 = vsel %vm1338_vm2, %v1315_v35, %v1317_v27  ;;  %v1765_v40 = vld [vmem:[#allocation2 + $0x548] sm:$0xff] }
 0x1ba   :  { %1482 = vrot.lane.b32.xlu1 %v2961_v14, %s2418_s10  ;;  %1480 = vrot.lane.b32.xlu0 %v3130_v3, %s2418_s10  ;;  %v2323_v9 = vpack.c.bf16 %v1341_v7, %v1339_v37 }
 0x1bc   :  { %v674_v38 = vpop.permute.xlu1 %673  ;;  %v672_v39 = vpop.permute.xlu0 %671 }
 0x1bd   :  { %v687_v57 = vsel %vm681_vm1, %v672_v39, %v674_v38  ;;  %v1767_v41 = vld [vmem:[#allocation2 + $0x558] sm:$0xff] }
 0x1be   :  { %703 = vst.msk [vmem:[#allocation2 + $0x328] sm:$0xff] %vm23_vm0, %v687_v57  ;;  %1478 = vrot.lane.b32.xlu1 %v3141_v25, %s2418_s10  ;;  %1472 = vrot.lane.b32.xlu0 %v3146_v26, %s2418_s10  ;;  %v2321_v19 = vpack.c.bf16 %v1767_v41, %v1765_v40 }
 0x1c0   :  { %v680_v42 = vpop.permute.xlu1 %679  ;;  %2322 = vmatprep.subr.bf16.mxu0 %v2321_v19  ;;  %v678_v1 = vpop.permute.xlu0 %677 }
 0x1c1   :  { %v689_v43 = vsel %vm681_vm1, %v678_v1, %v680_v42  ;;  %2324 = vmatpush1.bf16.msra.mxu0 %v2323_v9 }
 0x1c2   :  { %705 = vst.msk [vmem:[#allocation2 + $0x338] sm:$0xff] %vm23_vm0, %v689_v43  ;;  %880 = vrot.lane.b32.xlu1 %v2903_v59, %s2419_s21  ;;  %878 = vrot.lane.b32.xlu0 %v853_v8, %s2419_s21  ;;  %v1796_v43 = vld [vmem:[%s3363_s2] sm:$0xff] }
 0x1c4   :  { %v676_v46 = vpop.permute.xlu1 %675  ;;  %v670_v47 = vpop.permute.xlu0 %669 }
 0x1c5   :  { %v688_v49 = vsel %vm681_vm1, %v676_v46, %v678_v1  ;;  %v686_v50 = vsel %vm681_vm1, %v670_v47, %v672_v39  ;;  %v1697_v44 = vld [vmem:[#allocation2 + $0x328] sm:$0xff]  ;;  %v2421_v1 = vmov 0  }
 0x1c6   :  { %886 = vrot.lane.b32.xlu1 %v2915_v5, %s2419_s21  ;;  %884 = vrot.lane.b32.xlu0 %v3074_v58, %s2419_s21  ;;  %v2255_v56 = vpack.c.bf16 %v688_v49, %v686_v50 }
 0x1c7   :  { %2395 = vset.pattern.permute.xlu0 %v2421_v1  ;;  %2396 = vset.pattern.permute.xlu1 %v2421_v1 }
 0x1c8   :  { %v1331_v51 = vpop.permute.xlu1 %1330  ;;  %v1329_v36 = vpop.permute.xlu0 %1328 }
 0x1c9   :  { %v1344_v52 = vsel %vm1338_vm2, %v1329_v36, %v1331_v51  ;;  %v1699_v53 = vld [vmem:[#allocation2 + $0x338] sm:$0xff] }
 0x1ca   :  { %1360 = vst.msk [vmem:[#allocation2 + $0x568] sm:$0xff] %vm23_vm0, %v1344_v52  ;;  %882 = vrot.lane.b32.xlu1 %v3085_v2, %s2419_s21  ;;  %876 = vrot.lane.b32.xlu0 %v3090_v45, %s2419_s21  ;;  %v2253_v54 = vpack.c.bf16 %v1699_v53, %v1697_v44 }
 0x1cc   :  { %v1337_v60 = vpop.permute.xlu1 %1336  ;;  %v1335_v61 = vpop.permute.xlu0 %1334  ;;  %2254 = vmatprep.subr.bf16.mxu1 %v2253_v54 }
 0x1cd   :  { %v1346_v62 = vsel %vm1338_vm2, %v1335_v61, %v1337_v60  ;;  %2256 = vmatpush1.bf16.msra.mxu1 %v2255_v56 }
 0x1ce   :  { %1362 = vst.msk [vmem:[#allocation2 + $0x578] sm:$0xff] %vm23_vm0, %v1346_v62  ;;  %1537 = vrot.lane.b32.xlu1 %v2903_v59, %s2420_s0  ;;  %1535 = vrot.lane.b32.xlu0 %v853_v8, %s2420_s0 }
 0x1d0   :  { %v1333_v11 = vpop.permute.xlu1 %1332  ;;  %v1327_v12 = vpop.permute.xlu0 %1326 }
 0x1d1   :  { %v1345_v13 = vsel %vm1338_vm2, %v1333_v11, %v1335_v61  ;;  %v1343_v15 = vsel %vm1338_vm2, %v1327_v12, %v1329_v36  ;;  %v1769_v18 = vld [vmem:[#allocation2 + $0x568] sm:$0xff] }
 0x1d2   :  { %1543 = vrot.lane.b32.xlu1 %v2915_v5, %s2420_s0  ;;  %1541 = vrot.lane.b32.xlu0 %v3074_v58, %s2420_s0  ;;  %v2327_v5 = vpack.c.bf16 %v1345_v13, %v1343_v15 }
 0x1d4   :  { %v735_v59 = vpop.permute.xlu1 %734  ;;  %v733_v29 = vpop.permute.xlu0 %732 }
 0x1d5   :  { %v756_v17 = vsel %vm754_vm3, %v733_v29, %v735_v59  ;;  %v1771_v0 = vld [vmem:[#allocation2 + $0x578] sm:$0xff] }
 0x1d6   :  { %772 = vst.msk [vmem:[#allocation2 + $0x348] sm:$0xff] %vm23_vm0, %v756_v17  ;;  %1539 = vrot.lane.b32.xlu1 %v3085_v2, %s2420_s0  ;;  %1533 = vrot.lane.b32.xlu0 %v3090_v45, %s2420_s0  ;;  %v2325_v20 = vpack.c.bf16 %v1771_v0, %v1769_v18  ;;  %v1590_v2 = vld [vmem:[%s3362_s1 + $0x40] sm:$0xff]  ;;  %v1589_v45 = vld [vmem:[%s3362_s1 + $0x38] sm:$0xff] }
 0x1d7   :  { %1885 = vmatprep.mubr.f32.mxu1 %v1590_v2 }
 0x1d8   :  { %v741_v22 = vpop.permute.xlu1 %740  ;;  %2326 = vmatprep.subr.bf16.mxu0 %v2325_v20  ;;  %v739_v58 = vpop.permute.xlu0 %738  ;;  %1886 = vmatmul.mubr.f32.gmra.mrb[2].mxu1 %v1589_v45 }
 0x1d9   :  { %v758_v48 = vsel %vm754_vm3, %v739_v58, %v741_v22  ;;  %2328 = vmatpush1.bf16.msra.mxu0 %v2327_v5  ;;  %1956 = vmatprep.mubr.f32.mxu1 %v1585_v28 }
 0x1da   :  { %774 = vst.msk [vmem:[#allocation2 + $0x358] sm:$0xff] %vm23_vm0, %v758_v48  ;;  %892 = vrot.lane.b32.xlu1 %v2950_v63, %s2419_s21  ;;  %890 = vrot.lane.b32.xlu0 %v3119_v16, %s2419_s21 }
 0x1dc   :  { %v737_v23 = vpop.permute.xlu1 %736  ;;  %v731_v24 = vpop.permute.xlu0 %730 }
 0x1dd   :  { %v757_v55 = vsel %vm754_vm3, %v737_v23, %v739_v58  ;;  %v755_v27 = vsel %vm754_vm3, %v731_v24, %v733_v29  ;;  %v1701_v31 = vld [vmem:[#allocation2 + $0x348] sm:$0xff] }
 0x1de   :  { %898 = vrot.lane.b32.xlu1 %v2961_v14, %s2419_s21  ;;  %896 = vrot.lane.b32.xlu0 %v3130_v3, %s2419_s21  ;;  %v2259_v6 = vpack.c.bf16 %v757_v55, %v755_v27 }
 0x1e0   :  { %v1392_v4 = vpop.permute.xlu1 %1391  ;;  %v1390_v30 = vpop.permute.xlu0 %1389 }
 0x1e1   :  { %v1413_v21 = vsel %vm1411_vm4, %v1390_v30, %v1392_v4  ;;  %v1703_v32 = vld [vmem:[#allocation2 + $0x358] sm:$0xff] }
 0x1e2   :  { %1429 = vst.msk [vmem:[#allocation2 + $0x588] sm:$0xff] %vm23_vm0, %v1413_v21  ;;  %894 = vrot.lane.b32.xlu1 %v3141_v25, %s2419_s21  ;;  %888 = vrot.lane.b32.xlu0 %v3146_v26, %s2419_s21  ;;  %v2257_v33 = vpack.c.bf16 %v1703_v32, %v1701_v31 }
 0x1e4   :  { %v1398_v34 = vpop.permute.xlu1 %1397  ;;  %v1396_v35 = vpop.permute.xlu0 %1395  ;;  %2258 = vmatprep.subr.bf16.mxu1 %v2257_v33 }
 0x1e5   :  { %v1415_v7 = vsel %vm1411_vm4, %v1396_v35, %v1398_v34  ;;  %2260 = vmatpush1.bf16.msra.mxu1 %v2259_v6 }
 0x1e6   :  { %1431 = vst.msk [vmem:[#allocation2 + $0x598] sm:$0xff] %vm23_vm0, %v1415_v7  ;;  %1549 = vrot.lane.b32.xlu1 %v2950_v63, %s2420_s0  ;;  %1547 = vrot.lane.b32.xlu0 %v3119_v16, %s2420_s0 }
 0x1e8   :  { %v1394_v37 = vpop.permute.xlu1 %1393  ;;  %v1388_v38 = vpop.permute.xlu0 %1387 }
 0x1e9   :  { %v1414_v39 = vsel %vm1411_vm4, %v1394_v37, %v1396_v35  ;;  %v1412_v57 = vsel %vm1411_vm4, %v1388_v38, %v1390_v30  ;;  %v1773_v63 = vld [vmem:[#allocation2 + $0x588] sm:$0xff] }
 0x1ea   :  { %1555 = vrot.lane.b32.xlu1 %v2961_v14, %s2420_s0  ;;  %1553 = vrot.lane.b32.xlu0 %v3130_v3, %s2420_s0  ;;  %v2331_v9 = vpack.c.bf16 %v1414_v39, %v1412_v57 }
 0x1ec   :  { %v747_v40 = vpop.permute.xlu1 %746  ;;  %v745_v41 = vpop.permute.xlu0 %744 }
 0x1ed   :  { %v760_v19 = vsel %vm754_vm3, %v745_v41, %v747_v40  ;;  %v1775_v8 = vld [vmem:[#allocation2 + $0x598] sm:$0xff] }
 0x1ee   :  { %776 = vst.msk [vmem:[#allocation2 + $0x368] sm:$0xff] %vm23_vm0, %v760_v19  ;;  %1551 = vrot.lane.b32.xlu1 %v3141_v25, %s2420_s0  ;;  %1545 = vrot.lane.b32.xlu0 %v3146_v26, %s2420_s0  ;;  %v2329_v16 = vpack.c.bf16 %v1775_v8, %v1773_v63  ;;  %v1797_v25 = vld [vmem:[%s3363_s2 + $0x8] sm:$0xff] }
 0x1f0   :  { %v753_v14 = vpop.permute.xlu1 %752  ;;  %2330 = vmatprep.subr.bf16.mxu0 %v2329_v16  ;;  %v751_v42 = vpop.permute.xlu0 %750 }
 0x1f1   :  { %v762_v3 = vsel %vm754_vm3, %v751_v42, %v753_v14  ;;  %2332 = vmatpush1.bf16.msra.mxu0 %v2331_v9 }
 0x1f2   :  { %778 = vst.msk [vmem:[#allocation2 + $0x378] sm:$0xff] %vm23_vm0, %v762_v3  ;;  %1800 = vperm.xlu0 %2395, %v1796_v43   ;;  %1805 = vperm.xlu1 %2396, %v1797_v25  }
 0x1f4   :  { %v749_v26 = vpop.permute.xlu1 %748  ;;  %v743_v46 = vpop.permute.xlu0 %742 }
 0x1f5   :  { %v761_v47 = vsel %vm754_vm3, %v749_v26, %v751_v42  ;;  %v759_v49 = vsel %vm754_vm3, %v743_v46, %v745_v41  ;;  %v1705_v52 = vld [vmem:[#allocation2 + $0x368] sm:$0xff] }
 0x1f6   :  { %v2263_v54 = vpack.c.bf16 %v761_v47, %v759_v49 }
 0x1f8   :  { %v1404_v50 = vpop.permute.xlu1 %1403  ;;  %v1402_v51 = vpop.permute.xlu0 %1401 }
 0x1f9   :  { %v1417_v36 = vsel %vm1411_vm4, %v1402_v51, %v1404_v50  ;;  %v1707_v44 = vld [vmem:[#allocation2 + $0x378] sm:$0xff] }
 0x1fa   :  { %1433 = vst.msk [vmem:[#allocation2 + $0x5a8] sm:$0xff] %vm23_vm0, %v1417_v36  ;;  %v2261_v53 = vpack.c.bf16 %v1707_v44, %v1705_v52 }
 0x1fc   :  { %v1410_v56 = vpop.permute.xlu1 %1409  ;;  %v1408_v60 = vpop.permute.xlu0 %1407  ;;  %2262 = vmatprep.subr.bf16.mxu1 %v2261_v53 }
 0x1fd   :  { %v1419_v61 = vsel %vm1411_vm4, %v1408_v60, %v1410_v56  ;;  %2264 = vmatpush1.bf16.msra.mxu1 %v2263_v54 }
 0x1fe   :  { %1435 = vst.msk [vmem:[#allocation2 + $0x5b8] sm:$0xff] %vm23_vm0, %v1419_v61 }
 0x200   :  { %v1406_v62 = vpop.permute.xlu1 %1405  ;;  %v1400_v10 = vpop.permute.xlu0 %1399 }
 0x201   :  { %v1418_v11 = vsel %vm1411_vm4, %v1406_v62, %v1408_v60  ;;  %v1416_v12 = vsel %vm1411_vm4, %v1400_v10, %v1402_v51  ;;  %v1777_v29 = vld [vmem:[#allocation2 + $0x5a8] sm:$0xff] }
 0x202   :  { %v2335_v0 = vpack.c.bf16 %v1418_v11, %v1416_v12 }
 0x204   :  { %v808_v13 = vpop.permute.xlu1 %807  ;;  %v806_v15 = vpop.permute.xlu0 %805 }
 0x205   :  { %v829_v59 = vsel %vm827_vm5, %v806_v15, %v808_v13  ;;  %v1779_v17 = vld [vmem:[#allocation2 + $0x5b8] sm:$0xff] }
 0x206   :  { %845 = vst.msk [vmem:[#allocation2 + $0x388] sm:$0xff] %vm23_vm0, %v829_v59  ;;  %v2333_v18 = vpack.c.bf16 %v1779_v17, %v1777_v29  ;;  %v1586_v59 = vld [vmem:[%s3362_s1 + $0x20] sm:$0xff] }
 0x207   :  { %v1594_v29 = vld [vmem:[%s3362_s1 + $0x60] sm:$0xff] }
 0x208   :  { %v814_v20 = vpop.permute.xlu1 %813  ;;  %2334 = vmatprep.subr.bf16.mxu0 %v2333_v18  ;;  %v812_v5 = vpop.permute.xlu0 %811 }
 0x209   :  { %v831_v22 = vsel %vm827_vm5, %v812_v5, %v814_v20  ;;  %2336 = vmatpush1.bf16.msra.mxu0 %v2335_v0 }
 0x20a   :  { %847 = vst.msk [vmem:[#allocation2 + $0x398] sm:$0xff] %vm23_vm0, %v831_v22 }
 0x20c   :  { %v810_v58 = vpop.permute.xlu1 %809  ;;  %v804_v48 = vpop.permute.xlu0 %803 }
 0x20d   :  { %v830_v2 = vsel %vm827_vm5, %v810_v58, %v812_v5  ;;  %v828_v45 = vsel %vm827_vm5, %v804_v48, %v806_v15  ;;  %v1709_v27 = vld [vmem:[#allocation2 + $0x388] sm:$0xff]  ;;  %v1593_v5 = vld [vmem:[%s3362_s1 + $0x58] sm:$0xff] }
 0x20e   :  { %v2267_v30 = vpack.c.bf16 %v830_v2, %v828_v45 }
 0x210   :  { %v1465_v23 = vpop.permute.xlu1 %1464  ;;  %v1463_v24 = vpop.permute.xlu0 %1462 }
 0x211   :  { %v1486_v55 = vsel %vm1484_vm6, %v1463_v24, %v1465_v23  ;;  %v1711_v28 = vld [vmem:[#allocation2 + $0x398] sm:$0xff]  ;;  %v2422_v23 = vmov 0.0  }
 0x212   :  { %1502 = vst.msk [vmem:[#allocation2 + $0x5c8] sm:$0xff] %vm23_vm0, %v1486_v55  ;;  %v2265_v4 = vpack.c.bf16 %v1711_v28, %v1709_v27 }
 0x214   :  { %v1471_v21 = vpop.permute.xlu1 %1470  ;;  %v1469_v31 = vpop.permute.xlu0 %1468  ;;  %2266 = vmatprep.subr.bf16.mxu1 %v2265_v4 }
 0x215   :  { %v1488_v32 = vsel %vm1484_vm6, %v1469_v31, %v1471_v21  ;;  %2268 = vmatpush1.bf16.msra.mxu1 %v2267_v30 }
 0x216   :  { %1504 = vst.msk [vmem:[#allocation2 + $0x5d8] sm:$0xff] %vm23_vm0, %v1488_v32 }
 0x218   :  { %v1467_v33 = vpop.permute.xlu1 %1466  ;;  %v1461_v6 = vpop.permute.xlu0 %1460 }
 0x219   :  { %v1487_v34 = vsel %vm1484_vm6, %v1467_v33, %v1469_v31  ;;  %v1485_v35 = vsel %vm1484_vm6, %v1461_v6, %v1463_v24  ;;  %v1781_v39 = vld [vmem:[#allocation2 + $0x5c8] sm:$0xff] }
 0x21a   :  { %v2339_v41 = vpack.c.bf16 %v1487_v34, %v1485_v35 }
 0x21c   :  { %v820_v7 = vpop.permute.xlu1 %819  ;;  %v818_v37 = vpop.permute.xlu0 %817 }
 0x21d   :  { %v833_v38 = vsel %vm827_vm5, %v818_v37, %v820_v7  ;;  %v1783_v57 = vld [vmem:[#allocation2 + $0x5d8] sm:$0xff] }
 0x21e   :  { %849 = vst.msk [vmem:[#allocation2 + $0x3a8] sm:$0xff] %vm23_vm0, %v833_v38  ;;  %v2337_v40 = vpack.c.bf16 %v1783_v57, %v1781_v39 }
 0x220   :  { %v826_v19 = vpop.permute.xlu1 %825  ;;  %2338 = vmatprep.subr.bf16.mxu0 %v2337_v40  ;;  %v824_v63 = vpop.permute.xlu0 %823 }
 0x221   :  { %v835_v8 = vsel %vm827_vm5, %v824_v63, %v826_v19  ;;  %2340 = vmatpush1.bf16.msra.mxu0 %v2339_v41 }
 0x222   :  { %851 = vst.msk [vmem:[#allocation2 + $0x3b8] sm:$0xff] %vm23_vm0, %v835_v8 }
 0x224   :  { %v822_v16 = vpop.permute.xlu1 %821  ;;  %v816_v9 = vpop.permute.xlu0 %815 }
 0x225   :  { %v834_v14 = vsel %vm827_vm5, %v822_v16, %v824_v63  ;;  %v832_v42 = vsel %vm827_vm5, %v816_v9, %v818_v37  ;;  %v1713_v25 = vld [vmem:[#allocation2 + $0x3a8] sm:$0xff] }
 0x226   :  { %v2271_v47 = vpack.c.bf16 %v834_v14, %v832_v42 }
 0x228   :  { %v1477_v3 = vpop.permute.xlu1 %1476  ;;  %v1475_v1 = vpop.permute.xlu0 %1474 }
 0x229   :  { %v1490_v43 = vsel %vm1484_vm6, %v1475_v1, %v1477_v3  ;;  %v1715_v26 = vld [vmem:[#allocation2 + $0x3b8] sm:$0xff] }
 0x22a   :  { %1506 = vst.msk [vmem:[#allocation2 + $0x5e8] sm:$0xff] %vm23_vm0, %v1490_v43  ;;  %v2269_v46 = vpack.c.bf16 %v1715_v26, %v1713_v25 }
 0x22c   :  { %v1483_v49 = vpop.permute.xlu1 %1482  ;;  %v1481_v50 = vpop.permute.xlu0 %1480  ;;  %2270 = vmatprep.subr.bf16.mxu1 %v2269_v46 }
 0x22d   :  { %v1492_v51 = vsel %vm1484_vm6, %v1481_v50, %v1483_v49  ;;  %2272 = vmatpush1.bf16.msra.mxu1 %v2271_v47  ;;  %v1584_v47 = vld [vmem:[%s3362_s1 + $0x10] sm:$0xff] }
 0x22e   :  { %1508 = vst.msk [vmem:[#allocation2 + $0x5f8] sm:$0xff] %vm23_vm0, %v1492_v51  ;;  %v1592_v49 = vld [vmem:[%s3362_s1 + $0x50] sm:$0xff] }
 0x230   :  { %v1479_v36 = vpop.permute.xlu1 %1478  ;;  %v1473_v52 = vpop.permute.xlu0 %1472 }
 0x231   :  { %v1491_v44 = vsel %vm1484_vm6, %v1479_v36, %v1481_v50  ;;  %v1489_v53 = vsel %vm1484_vm6, %v1473_v52, %v1475_v1  ;;  %v1785_v61 = vld [vmem:[#allocation2 + $0x5e8] sm:$0xff] }
 0x232   :  { %v2343_v11 = vpack.c.bf16 %v1491_v44, %v1489_v53  ;;  %v1591_v44 = vld [vmem:[%s3362_s1 + $0x48] sm:$0xff] }
 0x234   :  { %v881_v54 = vpop.permute.xlu1 %880  ;;  %v879_v56 = vpop.permute.xlu0 %878 }
 0x235   :  { %v902_v60 = vsel %vm900_vm7, %v879_v56, %v881_v54  ;;  %v1787_v62 = vld [vmem:[#allocation2 + $0x5f8] sm:$0xff] }
 0x236   :  { %918 = vst.msk [vmem:[#allocation2 + $0x3c8] sm:$0xff] %vm23_vm0, %v902_v60  ;;  %v2341_v10 = vpack.c.bf16 %v1787_v62, %v1785_v61  ;;  %v1588_v61 = vld [vmem:[%s3362_s1 + $0x30] sm:$0xff]  ;;  %v1595_v62 = vld [vmem:[%s3362_s1 + $0x68] sm:$0xff] }
 0x238   :  { %v887_v12 = vpop.permute.xlu1 %886  ;;  %2342 = vmatprep.subr.bf16.mxu0 %v2341_v10  ;;  %v885_v13 = vpop.permute.xlu0 %884 }
 0x239   :  { %v904_v15 = vsel %vm900_vm7, %v885_v13, %v887_v12  ;;  %2344 = vmatpush1.bf16.msra.mxu0 %v2343_v11 }
 0x23a   :  { %920 = vst.msk [vmem:[#allocation2 + $0x3d8] sm:$0xff] %vm23_vm0, %v904_v15 }
 0x23c   :  { %v883_v17 = vpop.permute.xlu1 %882  ;;  %v877_v18 = vpop.permute.xlu0 %876  ;;  %2034 = vmatmul.mubr.f32.vlgmr.msra.gmra.mrb[0].mxu0 %v1586_v59 }
 0x23d   :  { %v903_v0 = vsel %vm900_vm7, %v883_v17, %v885_v13  ;;  %v901_v20 = vsel %vm900_vm7, %v877_v18, %v879_v56  ;;  %2039 = vmatprep.mubr.f32.mxu0 %v1594_v29  ;;  %v1717_v2 = vld [vmem:[#allocation2 + $0x3c8] sm:$0xff] }
 0x23e   :  { %v2275_v55 = vpack.c.bf16 %v903_v0, %v901_v20 }
 0x240   :  { %v1538_v22 = vpop.permute.xlu1 %1537  ;;  %v1536_v58 = vpop.permute.xlu0 %1535  ;;  %2040 = vmatmul.mubr.f32.gmra.mrb[2].mxu0 %v1593_v5 }
 0x241   :  { %v1559_v48 = vsel %vm1557_vm8, %v1536_v58, %v1538_v22  ;;  %v1719_v45 = vld [vmem:[#allocation2 + $0x3d8] sm:$0xff]  ;;  %2110 = vmatprep.mubr.f32.mxu0 %v2422_v23 }
 0x242   :  { %1575 = vst.msk [vmem:[#allocation2 + $0x608] sm:$0xff] %vm23_vm0, %v1559_v48  ;;  %v2273_v24 = vpack.c.bf16 %v1719_v45, %v1717_v2 }
 0x244   :  { %v1544_v27 = vpop.permute.xlu1 %1543  ;;  %v1542_v28 = vpop.permute.xlu0 %1541  ;;  %2274 = vmatprep.subr.bf16.mxu1 %v2273_v24 }
 0x245   :  { %v1561_v4 = vsel %vm1557_vm8, %v1542_v28, %v1544_v27  ;;  %2276 = vmatpush1.bf16.msra.mxu1 %v2275_v55 }
 0x246   :  { %1577 = vst.msk [vmem:[#allocation2 + $0x618] sm:$0xff] %vm23_vm0, %v1561_v4 }
 0x248   :  { %v1540_v30 = vpop.permute.xlu1 %1539  ;;  %v1534_v21 = vpop.permute.xlu0 %1533 }
 0x249   :  { %v1560_v31 = vsel %vm1557_vm8, %v1540_v30, %v1542_v28  ;;  %v1558_v32 = vsel %vm1557_vm8, %v1534_v21, %v1536_v58  ;;  %v1789_v35 = vld [vmem:[#allocation2 + $0x608] sm:$0xff] }
 0x24a   :  { %v2347_v38 = vpack.c.bf16 %v1560_v31, %v1558_v32 }
 0x24c   :  { %v893_v33 = vpop.permute.xlu1 %892  ;;  %v891_v6 = vpop.permute.xlu0 %890 }
 0x24d   :  { %v906_v34 = vsel %vm900_vm7, %v891_v6, %v893_v33  ;;  %v1791_v7 = vld [vmem:[#allocation2 + $0x618] sm:$0xff] }
 0x24e   :  { %922 = vst.msk [vmem:[#allocation2 + $0x3e8] sm:$0xff] %vm23_vm0, %v906_v34  ;;  %v2345_v37 = vpack.c.bf16 %v1791_v7, %v1789_v35 }
 0x250   :  { %v899_v39 = vpop.permute.xlu1 %898  ;;  %2346 = vmatprep.subr.bf16.mxu0 %v2345_v37  ;;  %v897_v57 = vpop.permute.xlu0 %896 }
 0x251   :  { %v908_v40 = vsel %vm900_vm7, %v897_v57, %v899_v39  ;;  %2348 = vmatpush1.bf16.msra.mxu0 %v2347_v38 }
 0x252   :  { %924 = vst.msk [vmem:[#allocation2 + $0x3f8] sm:$0xff] %vm23_vm0, %v908_v40 }
 0x254   :  { %v895_v41 = vpop.permute.xlu1 %894  ;;  %v889_v19 = vpop.permute.xlu0 %888 }
 0x255   :  { %v907_v63 = vsel %vm900_vm7, %v895_v41, %v897_v57  ;;  %v905_v8 = vsel %vm900_vm7, %v889_v19, %v891_v6  ;;  %v1721_v42 = vld [vmem:[#allocation2 + $0x3e8] sm:$0xff] }
 0x256   :  { %v2279_v43 = vpack.c.bf16 %v907_v63, %v905_v8 }
 0x258   :  { %v1550_v16 = vpop.permute.xlu1 %1549  ;;  %v1548_v9 = vpop.permute.xlu0 %1547 }
 0x259   :  { %v1563_v14 = vsel %vm1557_vm8, %v1548_v9, %v1550_v16  ;;  %v1723_v3 = vld [vmem:[#allocation2 + $0x3f8] sm:$0xff] }
 0x25a   :  { %1579 = vst.msk [vmem:[#allocation2 + $0x628] sm:$0xff] %vm23_vm0, %v1563_v14  ;;  %v2277_v1 = vpack.c.bf16 %v1723_v3, %v1721_v42 }
 0x25c   :  { %v1556_v25 = vpop.permute.xlu1 %1555  ;;  %v1554_v26 = vpop.permute.xlu0 %1553  ;;  %2278 = vmatprep.subr.bf16.mxu1 %v2277_v1 }
 0x25d   :  { %v1565_v46 = vsel %vm1557_vm8, %v1554_v26, %v1556_v25  ;;  %2280 = vmatpush1.bf16.msra.mxu1 %v2279_v43 }
 0x25e   :  { %1581 = vst.msk [vmem:[#allocation2 + $0x638] sm:$0xff] %vm23_vm0, %v1565_v46 }
 0x260   :  { %v1552_v50 = vpop.permute.xlu1 %1551  ;;  %v1546_v51 = vpop.permute.xlu0 %1545  ;;  %1957 = vmatmul.mubr.f32.vlgmr.msra.gmra.mrb[0].mxu1 %v1584_v47 }
 0x261   :  { %v1564_v36 = vsel %vm1557_vm8, %v1552_v50, %v1554_v26  ;;  %v1562_v52 = vsel %vm1557_vm8, %v1546_v51, %v1548_v9  ;;  %1962 = vmatprep.mubr.f32.mxu1 %v1592_v49  ;;  %v1793_v53 = vld [vmem:[#allocation2 + $0x628] sm:$0xff] }
 0x262   :  { %v2351_v60 = vpack.c.bf16 %v1564_v36, %v1562_v52 }
 0x264   :  { %1963 = vmatmul.mubr.f32.gmra.mrb[2].mxu1 %v1591_v44 }
 0x265   :  { %v1795_v54 = vld [vmem:[#allocation2 + $0x638] sm:$0xff] }
 0x266   :  { %v2349_v56 = vpack.c.bf16 %v1795_v54, %v1793_v53 }
 0x268   :  { %2350 = vmatprep.subr.bf16.mxu0 %v2349_v56 }
 0x269   :  { %2352 = vmatpush1.bf16.msra.mxu0 %v2351_v60 }
 0x26c   :  { %2151 = vmatmul.mubr.msk.f32.vlgmr.msra.gmra.mrb[0].mxu0 %vm1808_vm9, %v1588_v61 }
 0x26d   :  { %2116 = vmatprep.mubr.f32.mxu0 %v2422_v23 }
 0x270   :  { %2152 = vmatmul.mubr.msk.f32.gmra.mrb[2].mxu0 %vm1808_vm9, %v1595_v62 }
 0x271   :  { %v1801_v15 = vpop.permute.xlu0 %1800  ;;  %v1806_v17 = vpop.permute.xlu1 %1805 }
 0x333   :  { %v1958_v10 = vpop.f32.mrb[0].mxu1 }
 0x334   :  { %v1960_v11 = vpop.f32.mrb[1].mxu1  ;;  %v2353_v59 = vadd.f32 %v1958_v10, %v1801_v15 }
 0x335   :  { %v2355_v29 = vadd.f32 %v1960_v11, %v1801_v15 }
 0x337   :  { %v1964_v12 = vpop.f32.mrb[2].mxu1 }
 0x338   :  { %v1966_v13 = vpop.f32.mrb[3].mxu1  ;;  %v2357_v22 = vadd.f32 %v1964_v12, %v1806_v17 }
 0x339   :  { %v2359_v48 = vadd.f32 %v1966_v13, %v1806_v17 }
 0x33f   :  { %v2112_v18 = vpop.f32.mrb[0].mxu0 }
 0x340   :  { %v2354_v0 = vadd.f32 %v2353_v59, %v2112_v18  ;;  %v2114_v20 = vpop.f32.mrb[1].mxu0 }
 0x341   :  { %v2356_v5 = vadd.f32 %v2355_v29, %v2114_v20 }
 0x342   :  { %v2123_v58 = vadd.f32 3.0, %v2354_v0 }
 0x343   :  { %v2124_v2 = vadd.f32 3.0, %v2356_v5  ;;  %v2118_v45 = vpop.f32.mrb[2].mxu0 }
 0x344   :  { %v2127_v23 = vmax.f32 %v2123_v58, 0.0  ;;  %v2358_v24 = vadd.f32 %v2357_v22, %v2118_v45  ;;  %v2120_v55 = vpop.f32.mrb[3].mxu0 }
 0x345   :  { %v2128_v27 = vmax.f32 %v2124_v2, 0.0  ;;  %v2360_v28 = vadd.f32 %v2359_v48, %v2120_v55 }
 0x346   :  { %v2131_v4 = vmin.f32 %v2127_v23, 6.0  ;;  %v2125_v30 = vadd.f32 3.0, %v2358_v24 }
 0x347   :  { %v2132_v21 = vmin.f32 %v2128_v27, 6.0  ;;  %v2126_v31 = vadd.f32 3.0, %v2360_v28 }
 0x348   :  { %v2135_v32 = vmul.f32 %v2354_v0, %v2131_v4  ;;  %v2129_v33 = vmax.f32 %v2125_v30, 0.0 }
 0x349   :  { %v2136_v6 = vmul.f32 %v2356_v5, %v2132_v21  ;;  %v2130_v34 = vmax.f32 %v2126_v31, 0.0 }
 0x34a   :  { %v2139_v35 = vmul.f32 0.16666667, %v2135_v32  ;;  %v2133_v7 = vmin.f32 %v2129_v33, 6.0 }
 0x34b   :  { %v2140_v37 = vmul.f32 0.16666667, %v2136_v6  ;;  %v2134_v38 = vmin.f32 %v2130_v34, 6.0 }
 0x34c   :  { %2143 = vst [vmem:[%s3364_s3] sm:$0xff] %v2139_v35  ;;  %v2137_v39 = vmul.f32 %v2358_v24, %v2133_v7 }
 0x34d   :  { %2144 = vst.msk [vmem:[%s3364_s3 + $0x8] sm:$0xff] %vm23_vm0, %v2140_v37  ;;  %v2138_v57 = vmul.f32 %v2360_v28, %v2134_v38 }
 0x34e   :  { %v2141_v40 = vmul.f32 0.16666667, %v2137_v39 }
 0x34f   :  { %v2142_v41 = vmul.f32 0.16666667, %v2138_v57 }
 0x350   :  { %2145 = vst [vmem:[%s3364_s3 + $0x10] sm:$0xff] %v2141_v40 }
 0x351   :  { %2146 = vst.msk [vmem:[%s3364_s3 + $0x18] sm:$0xff] %vm23_vm0, %v2142_v41 }

</bundles_post_ra>
